<compile_context>
chip_gen: v5e
topology: v5e:2x2
jax: 0.10.0
libtpu: 0.0.40
codegen_flags: <defaults>
</compile_context>

<pallas_src>
from functools import partial

import jax
import jax.numpy as jnp
import numpy as np
from jax.experimental import pallas as pl
from jax.experimental.pallas import tpu as pltpu


# ----------------------------------------------------------------------------
# Fused Pallas kernel: the whole BasicRFB forward for one image per grid step.
# Activations are (C, H*W): channels on sublanes, flattened spatial on lanes.
# ----------------------------------------------------------------------------
def _rfb_fused_kernel(x_ref,
                      w00, b00, w01, b01,                      # branch0
                      w10, b10, w11, b11, w12, b12,            # branch1
                      w20, b20, w21, b21, w22, b22, w23, b23,  # branch2
                      wl0, wl1, wl2, ws, btail,                # tail
                      o_ref, *, H, W, visual):
    M = H * W
    f32 = jnp.float32
    bf16 = jnp.bfloat16

    # Column index -> x coordinate (masks row wrap-around of shifted taps).
    xcoord = jax.lax.broadcasted_iota(jnp.int32, (1, M), 1) % W

    def conv1x1(a_bf, w_ref, b_ref, relu):
        # a_bf: (Cin, M) bf16; w_ref: (Cout, Cin) bf16 -> (Cout, M) f32
        acc = jnp.dot(w_ref[...], a_bf, preferred_element_type=f32)
        acc = acc + b_ref[...]
        return jnp.maximum(acc, 0.0) if relu else acc

    def conv3x3(a, w_ref, b_ref, d, relu):
        # "same" 3x3 conv (padding=d, dilation=d) as ONE im2col matmul.
        # a: (Cin, M) f32; w_ref: (Cout, 9*Cin) bf16 (tap-major) -> (Cout, M) f32
        C = a.shape[0]
        halo = ((d * W + d + 127) // 128) * 128       # lane-tile-aligned halo
        z = jnp.zeros((C, halo), a.dtype)
        ap = jnp.concatenate([z, a, z], axis=1)       # zero-filled shift source
        valid_l = xcoord >= d                         # tap dx = -d stays in row
        valid_r = xcoord + d < W                      # tap dx = +d stays in row
        taps = []
        for ki in range(3):
            dy = (ki - 1) * d
            for kj in range(3):
                dx = (kj - 1) * d
                s = dy * W + dx
                t = ap[:, halo + s: halo + s + M]     # a[:, m + s] or 0
                if dx < 0:
                    t = jnp.where(valid_l, t, 0.0)
                elif dx > 0:
                    t = jnp.where(valid_r, t, 0.0)
                taps.append(t)
        col = jnp.concatenate(taps, axis=0).astype(bf16)   # (9*Cin, M) im2col
        acc = jnp.dot(w_ref[...], col, preferred_element_type=f32)
        acc = acc + b_ref[...]
        return jnp.maximum(acc, 0.0) if relu else acc

    x_bf = x_ref[0].astype(bf16)                      # (Cin, M)

    # branch0
    b0 = conv1x1(x_bf, w00, b00, relu=True)
    b0 = conv3x3(b0, w01, b01, d=visual, relu=False)
    # branch1
    b1 = conv1x1(x_bf, w10, b10, relu=True)
    b1 = conv3x3(b1, w11, b11, d=1, relu=True)
    b1 = conv3x3(b1, w12, b12, d=visual + 1, relu=False)
    # branch2
    b2 = conv1x1(x_bf, w20, b20, relu=True)
    b2 = conv3x3(b2, w21, b21, d=1, relu=True)
    b2 = conv3x3(b2, w22, b22, d=1, relu=True)
    b2 = conv3x3(b2, w23, b23, d=2 * visual + 1, relu=False)

    # Tail: ConvLinear over the (virtual) concat as three partial matmuls (the
    # RFB `scale` and BN scales are folded into wl*/btail), plus the 1x1
    # shortcut, then ReLU.  The concat buffer never materializes.
    lin = (jnp.dot(wl0[...], b0.astype(bf16), preferred_element_type=f32)
           + jnp.dot(wl1[...], b1.astype(bf16), preferred_element_type=f32)
           + jnp.dot(wl2[...], b2.astype(bf16), preferred_element_type=f32)
           + jnp.dot(ws[...], x_bf, preferred_element_type=f32))
    o_ref[0] = jnp.maximum(lin + btail[...], 0.0).astype(o_ref.dtype)


# ----------------------------------------------------------------------------
# Wrapper: one pallas_call, grid over batch (parallel -> v7x's 2 TensorCores).
# ----------------------------------------------------------------------------
def basic_rfb_forward(x_nchw, kparams, *, visual=1):
    """x_nchw: (N, Cin, H, W) float32.  kparams: flat list from build_kernel_params."""
    N, Cin, H, W = x_nchw.shape
    M = H * W
    Cout = kparams[-2].shape[0]                   # shortcut weight: (Cout, Cin)
    x2 = x_nchw.reshape(N, Cin, M)                # channel-major, spatial on lanes

    def whole(a):                                 # weights: resident, same every step
        return pl.BlockSpec(a.shape, lambda n: (0,) * a.ndim)

    out = pl.pallas_call(
        partial(_rfb_fused_kernel, H=H, W=W, visual=visual),
        out_shape=jax.ShapeDtypeStruct((N, Cout, M), jnp.float32),
        grid=(N,),
        in_specs=[pl.BlockSpec((1, Cin, M), lambda n: (n, 0, 0))]
                 + [whole(a) for a in kparams],
        out_specs=pl.BlockSpec((1, Cout, M), lambda n: (n, 0, 0)),
        compiler_params=pltpu.CompilerParams(
            dimension_semantics=("parallel",)),
    )(x2, *kparams)
    return out.reshape(N, Cout, H, W)


# ----------------------------------------------------------------------------
# Parameter folding / packing for the kernel.
#   - fold eval-mode BN scale into conv weights (bias kept as per-channel add)
#   - pad channel counts to multiples of 8 (aligned sublane tiles)
#   - rearrange 3x3 weights to (Cout, 9*Cin_pad) tap-major for im2col
#   - fold the RFB `scale` into ConvLinear; merge ConvLinear+shortcut biases
#   - cast matmul operands to bf16 (biases stay f32)
# ----------------------------------------------------------------------------
def build_kernel_params(p, scale):
    bf16 = jnp.bfloat16

    def f1(name, cout_pad=None):
        w4, s, b = p[name]
        w = w4[:, :, 0, 0] * s[:, None]
        bias = b
        if cout_pad is not None and cout_pad > w.shape[0]:
            w = jnp.pad(w, ((0, cout_pad - w.shape[0]), (0, 0)))
            bias = jnp.pad(bias, (0, cout_pad - bias.shape[0]))
        return w.astype(bf16), bias.reshape(-1, 1).astype(jnp.float32)

    def f3(name, cin_pad, cout_pad=None):
        w4, s, b = p[name]
        cout, cin = w4.shape[0], w4.shape[1]
        w = (w4 * s[:, None, None, None]).transpose(0, 2, 3, 1)   # (Co,3,3,Ci)
        if cin_pad > cin:
            w = jnp.pad(w, ((0, 0), (0, 0), (0, 0), (0, cin_pad - cin)))
        w = w.reshape(cout, 9 * cin_pad)
        bias = b
        if cout_pad is not None and cout_pad > cout:
            w = jnp.pad(w, ((0, cout_pad - cout), (0, 0)))
            bias = jnp.pad(bias, (0, cout_pad - cout))
        return w.astype(bf16), bias.reshape(-1, 1).astype(jnp.float32)

    flat = []
    flat += f1('b0_0')                              # 32 -> 8
    flat += f3('b0_1', cin_pad=8)                   # 8  -> 8     (d = visual)
    flat += f1('b1_0', cout_pad=8)                  # 32 -> 4(->8)
    flat += f3('b1_1', cin_pad=8)                   # 4(->8) -> 8
    flat += f3('b1_2', cin_pad=8)                   # 8  -> 8     (d = visual+1)
    flat += f1('b2_0', cout_pad=8)                  # 32 -> 4(->8)
    flat += f3('b2_1', cin_pad=8, cout_pad=8)       # 4(->8) -> 6(->8)
    flat += f3('b2_2', cin_pad=8)                   # 6(->8) -> 8
    flat += f3('b2_3', cin_pad=8)                   # 8  -> 8     (d = 2*visual+1)

    wl4, sl, bl = p['convlinear']
    ws4, ss, bs = p['shortcut']
    wl = wl4[:, :, 0, 0] * sl[:, None] * scale      # BN scale + RFB scale folded
    ws = ws4[:, :, 0, 0] * ss[:, None]              # BN scale folded
    c0 = p['b0_1'][0].shape[0]
    c1 = p['b1_2'][0].shape[0]
    c2 = p['b2_3'][0].shape[0]
    assert wl.shape[1] == c0 + c1 + c2
    btail = (bl * scale + bs).reshape(-1, 1).astype(jnp.float32)
    flat += [wl[:, :c0].astype(bf16),
             wl[:, c0:c0 + c1].astype(bf16),
             wl[:, c0 + c1:].astype(bf16),
             ws.astype(bf16),
             btail]
    return flat


# ----------------------------------------------------------------------------
# Pure-JAX reference (NCHW, f32) for the correctness check.
# ----------------------------------------------------------------------------
def ref_conv_bn(x, w4, s, b, *, padding=0, dilation=1, relu=True):
    y = jax.lax.conv_general_dilated(
        x, w4, window_strides=(1, 1),
        padding=((padding, padding), (padding, padding)),
        rhs_dilation=(dilation, dilation),
        dimension_numbers=('NCHW', 'OIHW', 'NCHW'))
    y = y * s.reshape(1, -1, 1, 1) + b.reshape(1, -1, 1, 1)
    return jnp.maximum(y, 0.0) if relu else y


def ref_forward(x, p, *, scale=0.1, visual=1):
    b0 = ref_conv_bn(x, *p['b0_0'])
    b0 = ref_conv_bn(b0, *p['b0_1'], padding=visual, dilation=visual, relu=False)
    b1 = ref_conv_bn(x, *p['b1_0'])
    b1 = ref_conv_bn(b1, *p['b1_1'], padding=1)
    b1 = ref_conv_bn(b1, *p['b1_2'], padding=visual + 1, dilation=visual + 1,
                     relu=False)
    b2 = ref_conv_bn(x, *p['b2_0'])
    b2 = ref_conv_bn(b2, *p['b2_1'], padding=1)
    b2 = ref_conv_bn(b2, *p['b2_2'], padding=1)
    b2 = ref_conv_bn(b2, *p['b2_3'], padding=2 * visual + 1,
                     dilation=2 * visual + 1, relu=False)
    cat = jnp.concatenate([b0, b1, b2], axis=1)
    lin = ref_conv_bn(cat, *p['convlinear'], relu=False)
    short = ref_conv_bn(x, *p['shortcut'], relu=False)
    return jnp.maximum(lin * scale + short, 0.0)


# ----------------------------------------------------------------------------
# Deterministic synthetic parameters (conv weight + folded eval-mode BN).
# ----------------------------------------------------------------------------
def make_conv_params(key, cin, cout, k):
    k1, k2, k3, k4, k5 = jax.random.split(key, 5)
    fan_in = cin * k * k
    w = jax.random.normal(k1, (cout, cin, k, k), jnp.float32) / np.sqrt(fan_in)
    gamma = 1.0 + 0.1 * jax.random.normal(k2, (cout,), jnp.float32)
    beta = 0.1 * jax.random.normal(k3, (cout,), jnp.float32)
    rmean = 0.1 * jax.random.normal(k4, (cout,), jnp.float32)
    rvar = 1.0 + 0.1 * jax.random.uniform(k5, (cout,), jnp.float32)
    s = gamma / jnp.sqrt(rvar + 1e-5)       # folded eval-mode BatchNorm
    b = beta - rmean * s
    return w, s, b


if __name__ == "__main__":
    N, in_planes, H, W = 2, 32, 16, 16
    out_planes = 32
    inter = in_planes // 8                  # 4
    visual = 1
    rfb_scale = 0.1

    key = jax.random.PRNGKey(0)
    kx, kp = jax.random.split(key)
    x = jax.random.normal(kx, (N, in_planes, H, W), jnp.float32)   # NCHW

    ks = jax.random.split(kp, 11)
    params = {
        'b0_0': make_conv_params(ks[0], in_planes, 2 * inter, 1),
        'b0_1': make_conv_params(ks[1], 2 * inter, 2 * inter, 3),
        'b1_0': make_conv_params(ks[2], in_planes, inter, 1),
        'b1_1': make_conv_params(ks[3], inter, 2 * inter, 3),
        'b1_2': make_conv_params(ks[4], 2 * inter, 2 * inter, 3),
        'b2_0': make_conv_params(ks[5], in_planes, inter, 1),
        'b2_1': make_conv_params(ks[6], inter, (inter // 2) * 3, 3),
        'b2_2': make_conv_params(ks[7], (inter // 2) * 3, 2 * inter, 3),
        'b2_3': make_conv_params(ks[8], 2 * inter, 2 * inter, 3),
        'convlinear': make_conv_params(ks[9], 6 * inter, out_planes, 1),
        'shortcut': make_conv_params(ks[10], in_planes, out_planes, 1),
    }

    kflat = build_kernel_params(params, rfb_scale)
    out = jax.block_until_ready(basic_rfb_forward(x, kflat, visual=visual))
    ref = jax.block_until_ready(ref_forward(x, params, scale=rfb_scale,
                                            visual=visual))

    # Slightly looser tolerance than the pure-f32 version: matmul operands are
    # bf16 (f32 accumulation / epilogue).  Any structural error would be O(1).
    np.testing.assert_allclose(np.asarray(out), np.asarray(ref),
                               atol=3e-2, rtol=3e-2)
    print("KERNEL_OK")
</pallas_src>

<mosaic_0001>
module attributes {stable_mosaic.version = 11 : i64} {
  func.func @_rfb_fused_kernel(%arg0: i32, %arg1: memref<1x32x256xf32, #tpu.memory_space<vmem>>, %arg2: memref<8x32xbf16, #tpu.memory_space<vmem>>, %arg3: memref<8x1xf32, #tpu.memory_space<vmem>>, %arg4: memref<8x72xbf16, #tpu.memory_space<vmem>>, %arg5: memref<8x1xf32, #tpu.memory_space<vmem>>, %arg6: memref<8x32xbf16, #tpu.memory_space<vmem>>, %arg7: memref<8x1xf32, #tpu.memory_space<vmem>>, %arg8: memref<8x72xbf16, #tpu.memory_space<vmem>>, %arg9: memref<8x1xf32, #tpu.memory_space<vmem>>, %arg10: memref<8x72xbf16, #tpu.memory_space<vmem>>, %arg11: memref<8x1xf32, #tpu.memory_space<vmem>>, %arg12: memref<8x32xbf16, #tpu.memory_space<vmem>>, %arg13: memref<8x1xf32, #tpu.memory_space<vmem>>, %arg14: memref<8x72xbf16, #tpu.memory_space<vmem>>, %arg15: memref<8x1xf32, #tpu.memory_space<vmem>>, %arg16: memref<8x72xbf16, #tpu.memory_space<vmem>>, %arg17: memref<8x1xf32, #tpu.memory_space<vmem>>, %arg18: memref<8x72xbf16, #tpu.memory_space<vmem>>, %arg19: memref<8x1xf32, #tpu.memory_space<vmem>>, %arg20: memref<32x8xbf16, #tpu.memory_space<vmem>>, %arg21: memref<32x8xbf16, #tpu.memory_space<vmem>>, %arg22: memref<32x8xbf16, #tpu.memory_space<vmem>>, %arg23: memref<32x32xbf16, #tpu.memory_space<vmem>>, %arg24: memref<32x1xf32, #tpu.memory_space<vmem>>, %arg25: memref<1x32x256xf32, #tpu.memory_space<vmem>>) attributes {dimension_semantics = [#tpu.dimension_semantics<parallel>], iteration_bounds = array<i64: 2>, scalar_prefetch = 0 : i64, scratch_operands = 0 : i64, tpu.core_type = #tpu.core_type<tc>, window_params = [{transform_indices = @transform_0, window_bounds = array<i64: 1, 32, 256>}, {pipeline_mode = #tpu.pipeline_mode<synchronous>, transform_indices = @transform_1, window_bounds = array<i64: 8, 32>}, {pipeline_mode = #tpu.pipeline_mode<synchronous>, transform_indices = @transform_2, window_bounds = array<i64: 8, 1>}, {pipeline_mode = #tpu.pipeline_mode<synchronous>, transform_indices = @transform_3, window_bounds = array<i64: 8, 72>}, {pipeline_mode = #tpu.pipeline_mode<synchronous>, transform_indices = @transform_4, window_bounds = array<i64: 8, 1>}, {pipeline_mode = #tpu.pipeline_mode<synchronous>, transform_indices = @transform_5, window_bounds = array<i64: 8, 32>}, {pipeline_mode = #tpu.pipeline_mode<synchronous>, transform_indices = @transform_6, window_bounds = array<i64: 8, 1>}, {pipeline_mode = #tpu.pipeline_mode<synchronous>, transform_indices = @transform_7, window_bounds = array<i64: 8, 72>}, {pipeline_mode = #tpu.pipeline_mode<synchronous>, transform_indices = @transform_8, window_bounds = array<i64: 8, 1>}, {pipeline_mode = #tpu.pipeline_mode<synchronous>, transform_indices = @transform_9, window_bounds = array<i64: 8, 72>}, {pipeline_mode = #tpu.pipeline_mode<synchronous>, transform_indices = @transform_10, window_bounds = array<i64: 8, 1>}, {pipeline_mode = #tpu.pipeline_mode<synchronous>, transform_indices = @transform_11, window_bounds = array<i64: 8, 32>}, {pipeline_mode = #tpu.pipeline_mode<synchronous>, transform_indices = @transform_12, window_bounds = array<i64: 8, 1>}, {pipeline_mode = #tpu.pipeline_mode<synchronous>, transform_indices = @transform_13, window_bounds = array<i64: 8, 72>}, {pipeline_mode = #tpu.pipeline_mode<synchronous>, transform_indices = @transform_14, window_bounds = array<i64: 8, 1>}, {pipeline_mode = #tpu.pipeline_mode<synchronous>, transform_indices = @transform_15, window_bounds = array<i64: 8, 72>}, {pipeline_mode = #tpu.pipeline_mode<synchronous>, transform_indices = @transform_16, window_bounds = array<i64: 8, 1>}, {pipeline_mode = #tpu.pipeline_mode<synchronous>, transform_indices = @transform_17, window_bounds = array<i64: 8, 72>}, {pipeline_mode = #tpu.pipeline_mode<synchronous>, transform_indices = @transform_18, window_bounds = array<i64: 8, 1>}, {pipeline_mode = #tpu.pipeline_mode<synchronous>, transform_indices = @transform_19, window_bounds = array<i64: 32, 8>}, {pipeline_mode = #tpu.pipeline_mode<synchronous>, transform_indices = @transform_20, window_bounds = array<i64: 32, 8>}, {pipeline_mode = #tpu.pipeline_mode<synchronous>, transform_indices = @transform_21, window_bounds = array<i64: 32, 8>}, {pipeline_mode = #tpu.pipeline_mode<synchronous>, transform_indices = @transform_22, window_bounds = array<i64: 32, 32>}, {pipeline_mode = #tpu.pipeline_mode<synchronous>, transform_indices = @transform_23, window_bounds = array<i64: 32, 1>}, {transform_indices = @transform_24, window_bounds = array<i64: 1, 32, 256>}]} {
    %0 = tpu.iota {dimensions = array<i32: 1>} : vector<1x256xi32>
    %c16_i32 = arith.constant 16 : i32
    %c0_i32 = arith.constant 0 : i32
    %1 = arith.cmpi eq, %c16_i32, %c0_i32 : i32
    %c1_i32 = arith.constant 1 : i32
    %2 = arith.select %1, %c1_i32, %c16_i32 : i32
    %3 = vector.broadcast %2 : i32 to vector<1x256xi32>
    %4 = arith.remsi %0, %3 : vector<1x256xi32>
    %c0_i32_0 = arith.constant 0 : i32
    %5 = vector.broadcast %c0_i32_0 : i32 to vector<1x256xi32>
    %6 = arith.cmpi ne, %4, %5 : vector<1x256xi32>
    %c0_i32_1 = arith.constant 0 : i32
    %7 = vector.broadcast %c0_i32_1 : i32 to vector<1x256xi32>
    %8 = arith.cmpi slt, %4, %7 : vector<1x256xi32>
    %c0_i32_2 = arith.constant 0 : i32
    %9 = arith.cmpi slt, %2, %c0_i32_2 : i32
    %10 = vector.broadcast %9 : i1 to vector<1x256xi1>
    %11 = vector.broadcast %10 : vector<1x256xi1> to vector<1x256xi1>
    %12 = arith.xori %8, %11 : vector<1x256xi1>
    %13 = arith.andi %12, %6 : vector<1x256xi1>
    %14 = vector.broadcast %2 : i32 to vector<1x256xi32>
    %15 = arith.addi %4, %14 : vector<1x256xi32>
    %16 = arith.select %13, %15, %4 : vector<1x256xi1>, vector<1x256xi32>
    %c0 = arith.constant 0 : index
    %c0_3 = arith.constant 0 : index
    %c0_4 = arith.constant 0 : index
    %17 = vector.load %arg1[%c0, %c0_3, %c0_4] : memref<1x32x256xf32, #tpu.memory_space<vmem>>, vector<1x32x256xf32>
    %18 = vector.shape_cast %17 : vector<1x32x256xf32> to vector<32x256xf32>
    %19 = arith.truncf %18 : vector<32x256xf32> to vector<32x256xbf16>
    %c0_5 = arith.constant 0 : index
    %c0_6 = arith.constant 0 : index
    %20 = vector.load %arg2[%c0_5, %c0_6] : memref<8x32xbf16, #tpu.memory_space<vmem>>, vector<8x32xbf16>
    %cst = arith.constant dense<0.000000e+00> : vector<8x256xf32>
    %21 = tpu.matmul %20, %19, %cst {dimension_numbers = #tpu.dot_dimension_numbers<[1], [0], [0], [1], [0, 0, 1, 1], [], []>} : vector<8x32xbf16>, vector<32x256xbf16>, vector<8x256xf32> -> vector<8x256xf32>
    %c0_7 = arith.constant 0 : index
    %c0_8 = arith.constant 0 : index
    %22 = vector.load %arg3[%c0_7, %c0_8] : memref<8x1xf32, #tpu.memory_space<vmem>>, vector<8x1xf32>
    %23 = vector.broadcast %22 : vector<8x1xf32> to vector<8x256xf32>
    %24 = arith.addf %21, %23 : vector<8x256xf32>
    %cst_9 = arith.constant 0.000000e+00 : f32
    %25 = vector.broadcast %cst_9 : f32 to vector<8x256xf32>
    %26 = arith.maximumf %24, %25 : vector<8x256xf32>
    %cst_10 = arith.constant 0.000000e+00 : f32
    %27 = vector.broadcast %cst_10 : f32 to vector<8x128xf32>
    %28 = tpu.concatenate %27, %26, %27 in 1 : vector<8x128xf32>, vector<8x256xf32>, vector<8x128xf32> -> vector<8x512xf32>
    %c1_i32_11 = arith.constant 1 : i32
    %29 = vector.broadcast %c1_i32_11 : i32 to vector<1x256xi32>
    %30 = arith.cmpi sge, %16, %29 : vector<1x256xi32>
    %c1_i32_12 = arith.constant 1 : i32
    %31 = vector.broadcast %c1_i32_12 : i32 to vector<1x256xi32>
    %32 = arith.addi %16, %31 : vector<1x256xi32>
    %c16_i32_13 = arith.constant 16 : i32
    %33 = vector.broadcast %c16_i32_13 : i32 to vector<1x256xi32>
    %34 = arith.cmpi slt, %32, %33 : vector<1x256xi32>
    %35 = vector.extract_strided_slice %28 {offsets = [0, 111], sizes = [8, 256], strides = [1, 1]} : vector<8x512xf32> to vector<8x256xf32>
    %cst_14 = arith.constant 0.000000e+00 : f32
    %36 = vector.shape_cast %30 : vector<1x256xi1> to vector<1x256xi1>
    %37 = vector.broadcast %36 : vector<1x256xi1> to vector<8x256xi1>
    %38 = vector.broadcast %cst_14 : f32 to vector<8x256xf32>
    %39 = arith.select %37, %35, %38 : vector<8x256xi1>, vector<8x256xf32>
    %40 = vector.extract_strided_slice %28 {offsets = [0, 112], sizes = [8, 256], strides = [1, 1]} : vector<8x512xf32> to vector<8x256xf32>
    %41 = vector.extract_strided_slice %28 {offsets = [0, 113], sizes = [8, 256], strides = [1, 1]} : vector<8x512xf32> to vector<8x256xf32>
    %cst_15 = arith.constant 0.000000e+00 : f32
    %42 = vector.shape_cast %34 : vector<1x256xi1> to vector<1x256xi1>
    %43 = vector.broadcast %42 : vector<1x256xi1> to vector<8x256xi1>
    %44 = vector.broadcast %cst_15 : f32 to vector<8x256xf32>
    %45 = arith.select %43, %41, %44 : vector<8x256xi1>, vector<8x256xf32>
    %46 = vector.extract_strided_slice %28 {offsets = [0, 127], sizes = [8, 256], strides = [1, 1]} : vector<8x512xf32> to vector<8x256xf32>
    %cst_16 = arith.constant 0.000000e+00 : f32
    %47 = vector.shape_cast %30 : vector<1x256xi1> to vector<1x256xi1>
    %48 = vector.broadcast %47 : vector<1x256xi1> to vector<8x256xi1>
    %49 = vector.broadcast %cst_16 : f32 to vector<8x256xf32>
    %50 = arith.select %48, %46, %49 : vector<8x256xi1>, vector<8x256xf32>
    %51 = vector.extract_strided_slice %28 {offsets = [0, 128], sizes = [8, 256], strides = [1, 1]} : vector<8x512xf32> to vector<8x256xf32>
    %52 = vector.extract_strided_slice %28 {offsets = [0, 129], sizes = [8, 256], strides = [1, 1]} : vector<8x512xf32> to vector<8x256xf32>
    %cst_17 = arith.constant 0.000000e+00 : f32
    %53 = vector.shape_cast %34 : vector<1x256xi1> to vector<1x256xi1>
    %54 = vector.broadcast %53 : vector<1x256xi1> to vector<8x256xi1>
    %55 = vector.broadcast %cst_17 : f32 to vector<8x256xf32>
    %56 = arith.select %54, %52, %55 : vector<8x256xi1>, vector<8x256xf32>
    %57 = vector.extract_strided_slice %28 {offsets = [0, 143], sizes = [8, 256], strides = [1, 1]} : vector<8x512xf32> to vector<8x256xf32>
    %cst_18 = arith.constant 0.000000e+00 : f32
    %58 = vector.shape_cast %30 : vector<1x256xi1> to vector<1x256xi1>
    %59 = vector.broadcast %58 : vector<1x256xi1> to vector<8x256xi1>
    %60 = vector.broadcast %cst_18 : f32 to vector<8x256xf32>
    %61 = arith.select %59, %57, %60 : vector<8x256xi1>, vector<8x256xf32>
    %62 = vector.extract_strided_slice %28 {offsets = [0, 144], sizes = [8, 256], strides = [1, 1]} : vector<8x512xf32> to vector<8x256xf32>
    %63 = vector.extract_strided_slice %28 {offsets = [0, 145], sizes = [8, 256], strides = [1, 1]} : vector<8x512xf32> to vector<8x256xf32>
    %cst_19 = arith.constant 0.000000e+00 : f32
    %64 = vector.shape_cast %34 : vector<1x256xi1> to vector<1x256xi1>
    %65 = vector.broadcast %64 : vector<1x256xi1> to vector<8x256xi1>
    %66 = vector.broadcast %cst_19 : f32 to vector<8x256xf32>
    %67 = arith.select %65, %63, %66 : vector<8x256xi1>, vector<8x256xf32>
    %68 = tpu.concatenate %39, %40, %45, %50, %51, %56, %61, %62, %67 in 0 : vector<8x256xf32>, vector<8x256xf32>, vector<8x256xf32>, vector<8x256xf32>, vector<8x256xf32>, vector<8x256xf32>, vector<8x256xf32>, vector<8x256xf32>, vector<8x256xf32> -> vector<72x256xf32>
    %69 = arith.truncf %68 : vector<72x256xf32> to vector<72x256xbf16>
    %c0_20 = arith.constant 0 : index
    %c0_21 = arith.constant 0 : index
    %70 = vector.load %arg4[%c0_20, %c0_21] : memref<8x72xbf16, #tpu.memory_space<vmem>>, vector<8x72xbf16>
    %cst_22 = arith.constant dense<0.000000e+00> : vector<8x256xf32>
    %71 = tpu.matmul %70, %69, %cst_22 {dimension_numbers = #tpu.dot_dimension_numbers<[1], [0], [0], [1], [0, 0, 1, 1], [], []>} : vector<8x72xbf16>, vector<72x256xbf16>, vector<8x256xf32> -> vector<8x256xf32>
    %c0_23 = arith.constant 0 : index
    %c0_24 = arith.constant 0 : index
    %72 = vector.load %arg5[%c0_23, %c0_24] : memref<8x1xf32, #tpu.memory_space<vmem>>, vector<8x1xf32>
    %73 = vector.broadcast %72 : vector<8x1xf32> to vector<8x256xf32>
    %74 = arith.addf %71, %73 : vector<8x256xf32>
    %c0_25 = arith.constant 0 : index
    %c0_26 = arith.constant 0 : index
    %75 = vector.load %arg6[%c0_25, %c0_26] : memref<8x32xbf16, #tpu.memory_space<vmem>>, vector<8x32xbf16>
    %cst_27 = arith.constant dense<0.000000e+00> : vector<8x256xf32>
    %76 = tpu.matmul %75, %19, %cst_27 {dimension_numbers = #tpu.dot_dimension_numbers<[1], [0], [0], [1], [0, 0, 1, 1], [], []>} : vector<8x32xbf16>, vector<32x256xbf16>, vector<8x256xf32> -> vector<8x256xf32>
    %c0_28 = arith.constant 0 : index
    %c0_29 = arith.constant 0 : index
    %77 = vector.load %arg7[%c0_28, %c0_29] : memref<8x1xf32, #tpu.memory_space<vmem>>, vector<8x1xf32>
    %78 = vector.broadcast %77 : vector<8x1xf32> to vector<8x256xf32>
    %79 = arith.addf %76, %78 : vector<8x256xf32>
    %cst_30 = arith.constant 0.000000e+00 : f32
    %80 = vector.broadcast %cst_30 : f32 to vector<8x256xf32>
    %81 = arith.maximumf %79, %80 : vector<8x256xf32>
    %cst_31 = arith.constant 0.000000e+00 : f32
    %82 = vector.broadcast %cst_31 : f32 to vector<8x128xf32>
    %83 = tpu.concatenate %82, %81, %82 in 1 : vector<8x128xf32>, vector<8x256xf32>, vector<8x128xf32> -> vector<8x512xf32>
    %c1_i32_32 = arith.constant 1 : i32
    %84 = vector.broadcast %c1_i32_32 : i32 to vector<1x256xi32>
    %85 = arith.cmpi sge, %16, %84 : vector<1x256xi32>
    %c1_i32_33 = arith.constant 1 : i32
    %86 = vector.broadcast %c1_i32_33 : i32 to vector<1x256xi32>
    %87 = arith.addi %16, %86 : vector<1x256xi32>
    %c16_i32_34 = arith.constant 16 : i32
    %88 = vector.broadcast %c16_i32_34 : i32 to vector<1x256xi32>
    %89 = arith.cmpi slt, %87, %88 : vector<1x256xi32>
    %90 = vector.extract_strided_slice %83 {offsets = [0, 111], sizes = [8, 256], strides = [1, 1]} : vector<8x512xf32> to vector<8x256xf32>
    %cst_35 = arith.constant 0.000000e+00 : f32
    %91 = vector.shape_cast %85 : vector<1x256xi1> to vector<1x256xi1>
    %92 = vector.broadcast %91 : vector<1x256xi1> to vector<8x256xi1>
    %93 = vector.broadcast %cst_35 : f32 to vector<8x256xf32>
    %94 = arith.select %92, %90, %93 : vector<8x256xi1>, vector<8x256xf32>
    %95 = vector.extract_strided_slice %83 {offsets = [0, 112], sizes = [8, 256], strides = [1, 1]} : vector<8x512xf32> to vector<8x256xf32>
    %96 = vector.extract_strided_slice %83 {offsets = [0, 113], sizes = [8, 256], strides = [1, 1]} : vector<8x512xf32> to vector<8x256xf32>
    %cst_36 = arith.constant 0.000000e+00 : f32
    %97 = vector.shape_cast %89 : vector<1x256xi1> to vector<1x256xi1>
    %98 = vector.broadcast %97 : vector<1x256xi1> to vector<8x256xi1>
    %99 = vector.broadcast %cst_36 : f32 to vector<8x256xf32>
    %100 = arith.select %98, %96, %99 : vector<8x256xi1>, vector<8x256xf32>
    %101 = vector.extract_strided_slice %83 {offsets = [0, 127], sizes = [8, 256], strides = [1, 1]} : vector<8x512xf32> to vector<8x256xf32>
    %cst_37 = arith.constant 0.000000e+00 : f32
    %102 = vector.shape_cast %85 : vector<1x256xi1> to vector<1x256xi1>
    %103 = vector.broadcast %102 : vector<1x256xi1> to vector<8x256xi1>
    %104 = vector.broadcast %cst_37 : f32 to vector<8x256xf32>
    %105 = arith.select %103, %101, %104 : vector<8x256xi1>, vector<8x256xf32>
    %106 = vector.extract_strided_slice %83 {offsets = [0, 128], sizes = [8, 256], strides = [1, 1]} : vector<8x512xf32> to vector<8x256xf32>
    %107 = vector.extract_strided_slice %83 {offsets = [0, 129], sizes = [8, 256], strides = [1, 1]} : vector<8x512xf32> to vector<8x256xf32>
    %cst_38 = arith.constant 0.000000e+00 : f32
    %108 = vector.shape_cast %89 : vector<1x256xi1> to vector<1x256xi1>
    %109 = vector.broadcast %108 : vector<1x256xi1> to vector<8x256xi1>
    %110 = vector.broadcast %cst_38 : f32 to vector<8x256xf32>
    %111 = arith.select %109, %107, %110 : vector<8x256xi1>, vector<8x256xf32>
    %112 = vector.extract_strided_slice %83 {offsets = [0, 143], sizes = [8, 256], strides = [1, 1]} : vector<8x512xf32> to vector<8x256xf32>
    %cst_39 = arith.constant 0.000000e+00 : f32
    %113 = vector.shape_cast %85 : vector<1x256xi1> to vector<1x256xi1>
    %114 = vector.broadcast %113 : vector<1x256xi1> to vector<8x256xi1>
    %115 = vector.broadcast %cst_39 : f32 to vector<8x256xf32>
    %116 = arith.select %114, %112, %115 : vector<8x256xi1>, vector<8x256xf32>
    %117 = vector.extract_strided_slice %83 {offsets = [0, 144], sizes = [8, 256], strides = [1, 1]} : vector<8x512xf32> to vector<8x256xf32>
    %118 = vector.extract_strided_slice %83 {offsets = [0, 145], sizes = [8, 256], strides = [1, 1]} : vector<8x512xf32> to vector<8x256xf32>
    %cst_40 = arith.constant 0.000000e+00 : f32
    %119 = vector.shape_cast %89 : vector<1x256xi1> to vector<1x256xi1>
    %120 = vector.broadcast %119 : vector<1x256xi1> to vector<8x256xi1>
    %121 = vector.broadcast %cst_40 : f32 to vector<8x256xf32>
    %122 = arith.select %120, %118, %121 : vector<8x256xi1>, vector<8x256xf32>
    %123 = tpu.concatenate %94, %95, %100, %105, %106, %111, %116, %117, %122 in 0 : vector<8x256xf32>, vector<8x256xf32>, vector<8x256xf32>, vector<8x256xf32>, vector<8x256xf32>, vector<8x256xf32>, vector<8x256xf32>, vector<8x256xf32>, vector<8x256xf32> -> vector<72x256xf32>
    %124 = arith.truncf %123 : vector<72x256xf32> to vector<72x256xbf16>
    %c0_41 = arith.constant 0 : index
    %c0_42 = arith.constant 0 : index
    %125 = vector.load %arg8[%c0_41, %c0_42] : memref<8x72xbf16, #tpu.memory_space<vmem>>, vector<8x72xbf16>
    %cst_43 = arith.constant dense<0.000000e+00> : vector<8x256xf32>
    %126 = tpu.matmul %125, %124, %cst_43 {dimension_numbers = #tpu.dot_dimension_numbers<[1], [0], [0], [1], [0, 0, 1, 1], [], []>} : vector<8x72xbf16>, vector<72x256xbf16>, vector<8x256xf32> -> vector<8x256xf32>
    %c0_44 = arith.constant 0 : index
    %c0_45 = arith.constant 0 : index
    %127 = vector.load %arg9[%c0_44, %c0_45] : memref<8x1xf32, #tpu.memory_space<vmem>>, vector<8x1xf32>
    %128 = vector.broadcast %127 : vector<8x1xf32> to vector<8x256xf32>
    %129 = arith.addf %126, %128 : vector<8x256xf32>
    %cst_46 = arith.constant 0.000000e+00 : f32
    %130 = vector.broadcast %cst_46 : f32 to vector<8x256xf32>
    %131 = arith.maximumf %129, %130 : vector<8x256xf32>
    %cst_47 = arith.constant 0.000000e+00 : f32
    %132 = vector.broadcast %cst_47 : f32 to vector<8x128xf32>
    %133 = tpu.concatenate %132, %131, %132 in 1 : vector<8x128xf32>, vector<8x256xf32>, vector<8x128xf32> -> vector<8x512xf32>
    %c2_i32 = arith.constant 2 : i32
    %134 = vector.broadcast %c2_i32 : i32 to vector<1x256xi32>
    %135 = arith.cmpi sge, %16, %134 : vector<1x256xi32>
    %c2_i32_48 = arith.constant 2 : i32
    %136 = vector.broadcast %c2_i32_48 : i32 to vector<1x256xi32>
    %137 = arith.addi %16, %136 : vector<1x256xi32>
    %c16_i32_49 = arith.constant 16 : i32
    %138 = vector.broadcast %c16_i32_49 : i32 to vector<1x256xi32>
    %139 = arith.cmpi slt, %137, %138 : vector<1x256xi32>
    %140 = vector.extract_strided_slice %133 {offsets = [0, 94], sizes = [8, 256], strides = [1, 1]} : vector<8x512xf32> to vector<8x256xf32>
    %cst_50 = arith.constant 0.000000e+00 : f32
    %141 = vector.shape_cast %135 : vector<1x256xi1> to vector<1x256xi1>
    %142 = vector.broadcast %141 : vector<1x256xi1> to vector<8x256xi1>
    %143 = vector.broadcast %cst_50 : f32 to vector<8x256xf32>
    %144 = arith.select %142, %140, %143 : vector<8x256xi1>, vector<8x256xf32>
    %145 = vector.extract_strided_slice %133 {offsets = [0, 96], sizes = [8, 256], strides = [1, 1]} : vector<8x512xf32> to vector<8x256xf32>
    %146 = vector.extract_strided_slice %133 {offsets = [0, 98], sizes = [8, 256], strides = [1, 1]} : vector<8x512xf32> to vector<8x256xf32>
    %cst_51 = arith.constant 0.000000e+00 : f32
    %147 = vector.shape_cast %139 : vector<1x256xi1> to vector<1x256xi1>
    %148 = vector.broadcast %147 : vector<1x256xi1> to vector<8x256xi1>
    %149 = vector.broadcast %cst_51 : f32 to vector<8x256xf32>
    %150 = arith.select %148, %146, %149 : vector<8x256xi1>, vector<8x256xf32>
    %151 = vector.extract_strided_slice %133 {offsets = [0, 126], sizes = [8, 256], strides = [1, 1]} : vector<8x512xf32> to vector<8x256xf32>
    %cst_52 = arith.constant 0.000000e+00 : f32
    %152 = vector.shape_cast %135 : vector<1x256xi1> to vector<1x256xi1>
    %153 = vector.broadcast %152 : vector<1x256xi1> to vector<8x256xi1>
    %154 = vector.broadcast %cst_52 : f32 to vector<8x256xf32>
    %155 = arith.select %153, %151, %154 : vector<8x256xi1>, vector<8x256xf32>
    %156 = vector.extract_strided_slice %133 {offsets = [0, 128], sizes = [8, 256], strides = [1, 1]} : vector<8x512xf32> to vector<8x256xf32>
    %157 = vector.extract_strided_slice %133 {offsets = [0, 130], sizes = [8, 256], strides = [1, 1]} : vector<8x512xf32> to vector<8x256xf32>
    %cst_53 = arith.constant 0.000000e+00 : f32
    %158 = vector.shape_cast %139 : vector<1x256xi1> to vector<1x256xi1>
    %159 = vector.broadcast %158 : vector<1x256xi1> to vector<8x256xi1>
    %160 = vector.broadcast %cst_53 : f32 to vector<8x256xf32>
    %161 = arith.select %159, %157, %160 : vector<8x256xi1>, vector<8x256xf32>
    %162 = vector.extract_strided_slice %133 {offsets = [0, 158], sizes = [8, 256], strides = [1, 1]} : vector<8x512xf32> to vector<8x256xf32>
    %cst_54 = arith.constant 0.000000e+00 : f32
    %163 = vector.shape_cast %135 : vector<1x256xi1> to vector<1x256xi1>
    %164 = vector.broadcast %163 : vector<1x256xi1> to vector<8x256xi1>
    %165 = vector.broadcast %cst_54 : f32 to vector<8x256xf32>
    %166 = arith.select %164, %162, %165 : vector<8x256xi1>, vector<8x256xf32>
    %167 = vector.extract_strided_slice %133 {offsets = [0, 160], sizes = [8, 256], strides = [1, 1]} : vector<8x512xf32> to vector<8x256xf32>
    %168 = vector.extract_strided_slice %133 {offsets = [0, 162], sizes = [8, 256], strides = [1, 1]} : vector<8x512xf32> to vector<8x256xf32>
    %cst_55 = arith.constant 0.000000e+00 : f32
    %169 = vector.shape_cast %139 : vector<1x256xi1> to vector<1x256xi1>
    %170 = vector.broadcast %169 : vector<1x256xi1> to vector<8x256xi1>
    %171 = vector.broadcast %cst_55 : f32 to vector<8x256xf32>
    %172 = arith.select %170, %168, %171 : vector<8x256xi1>, vector<8x256xf32>
    %173 = tpu.concatenate %144, %145, %150, %155, %156, %161, %166, %167, %172 in 0 : vector<8x256xf32>, vector<8x256xf32>, vector<8x256xf32>, vector<8x256xf32>, vector<8x256xf32>, vector<8x256xf32>, vector<8x256xf32>, vector<8x256xf32>, vector<8x256xf32> -> vector<72x256xf32>
    %174 = arith.truncf %173 : vector<72x256xf32> to vector<72x256xbf16>
    %c0_56 = arith.constant 0 : index
    %c0_57 = arith.constant 0 : index
    %175 = vector.load %arg10[%c0_56, %c0_57] : memref<8x72xbf16, #tpu.memory_space<vmem>>, vector<8x72xbf16>
    %cst_58 = arith.constant dense<0.000000e+00> : vector<8x256xf32>
    %176 = tpu.matmul %175, %174, %cst_58 {dimension_numbers = #tpu.dot_dimension_numbers<[1], [0], [0], [1], [0, 0, 1, 1], [], []>} : vector<8x72xbf16>, vector<72x256xbf16>, vector<8x256xf32> -> vector<8x256xf32>
    %c0_59 = arith.constant 0 : index
    %c0_60 = arith.constant 0 : index
    %177 = vector.load %arg11[%c0_59, %c0_60] : memref<8x1xf32, #tpu.memory_space<vmem>>, vector<8x1xf32>
    %178 = vector.broadcast %177 : vector<8x1xf32> to vector<8x256xf32>
    %179 = arith.addf %176, %178 : vector<8x256xf32>
    %c0_61 = arith.constant 0 : index
    %c0_62 = arith.constant 0 : index
    %180 = vector.load %arg12[%c0_61, %c0_62] : memref<8x32xbf16, #tpu.memory_space<vmem>>, vector<8x32xbf16>
    %cst_63 = arith.constant dense<0.000000e+00> : vector<8x256xf32>
    %181 = tpu.matmul %180, %19, %cst_63 {dimension_numbers = #tpu.dot_dimension_numbers<[1], [0], [0], [1], [0, 0, 1, 1], [], []>} : vector<8x32xbf16>, vector<32x256xbf16>, vector<8x256xf32> -> vector<8x256xf32>
    %c0_64 = arith.constant 0 : index
    %c0_65 = arith.constant 0 : index
    %182 = vector.load %arg13[%c0_64, %c0_65] : memref<8x1xf32, #tpu.memory_space<vmem>>, vector<8x1xf32>
    %183 = vector.broadcast %182 : vector<8x1xf32> to vector<8x256xf32>
    %184 = arith.addf %181, %183 : vector<8x256xf32>
    %cst_66 = arith.constant 0.000000e+00 : f32
    %185 = vector.broadcast %cst_66 : f32 to vector<8x256xf32>
    %186 = arith.maximumf %184, %185 : vector<8x256xf32>
    %cst_67 = arith.constant 0.000000e+00 : f32
    %187 = vector.broadcast %cst_67 : f32 to vector<8x128xf32>
    %188 = tpu.concatenate %187, %186, %187 in 1 : vector<8x128xf32>, vector<8x256xf32>, vector<8x128xf32> -> vector<8x512xf32>
    %c1_i32_68 = arith.constant 1 : i32
    %189 = vector.broadcast %c1_i32_68 : i32 to vector<1x256xi32>
    %190 = arith.cmpi sge, %16, %189 : vector<1x256xi32>
    %c1_i32_69 = arith.constant 1 : i32
    %191 = vector.broadcast %c1_i32_69 : i32 to vector<1x256xi32>
    %192 = arith.addi %16, %191 : vector<1x256xi32>
    %c16_i32_70 = arith.constant 16 : i32
    %193 = vector.broadcast %c16_i32_70 : i32 to vector<1x256xi32>
    %194 = arith.cmpi slt, %192, %193 : vector<1x256xi32>
    %195 = vector.extract_strided_slice %188 {offsets = [0, 111], sizes = [8, 256], strides = [1, 1]} : vector<8x512xf32> to vector<8x256xf32>
    %cst_71 = arith.constant 0.000000e+00 : f32
    %196 = vector.shape_cast %190 : vector<1x256xi1> to vector<1x256xi1>
    %197 = vector.broadcast %196 : vector<1x256xi1> to vector<8x256xi1>
    %198 = vector.broadcast %cst_71 : f32 to vector<8x256xf32>
    %199 = arith.select %197, %195, %198 : vector<8x256xi1>, vector<8x256xf32>
    %200 = vector.extract_strided_slice %188 {offsets = [0, 112], sizes = [8, 256], strides = [1, 1]} : vector<8x512xf32> to vector<8x256xf32>
    %201 = vector.extract_strided_slice %188 {offsets = [0, 113], sizes = [8, 256], strides = [1, 1]} : vector<8x512xf32> to vector<8x256xf32>
    %cst_72 = arith.constant 0.000000e+00 : f32
    %202 = vector.shape_cast %194 : vector<1x256xi1> to vector<1x256xi1>
    %203 = vector.broadcast %202 : vector<1x256xi1> to vector<8x256xi1>
    %204 = vector.broadcast %cst_72 : f32 to vector<8x256xf32>
    %205 = arith.select %203, %201, %204 : vector<8x256xi1>, vector<8x256xf32>
    %206 = vector.extract_strided_slice %188 {offsets = [0, 127], sizes = [8, 256], strides = [1, 1]} : vector<8x512xf32> to vector<8x256xf32>
    %cst_73 = arith.constant 0.000000e+00 : f32
    %207 = vector.shape_cast %190 : vector<1x256xi1> to vector<1x256xi1>
    %208 = vector.broadcast %207 : vector<1x256xi1> to vector<8x256xi1>
    %209 = vector.broadcast %cst_73 : f32 to vector<8x256xf32>
    %210 = arith.select %208, %206, %209 : vector<8x256xi1>, vector<8x256xf32>
    %211 = vector.extract_strided_slice %188 {offsets = [0, 128], sizes = [8, 256], strides = [1, 1]} : vector<8x512xf32> to vector<8x256xf32>
    %212 = vector.extract_strided_slice %188 {offsets = [0, 129], sizes = [8, 256], strides = [1, 1]} : vector<8x512xf32> to vector<8x256xf32>
    %cst_74 = arith.constant 0.000000e+00 : f32
    %213 = vector.shape_cast %194 : vector<1x256xi1> to vector<1x256xi1>
    %214 = vector.broadcast %213 : vector<1x256xi1> to vector<8x256xi1>
    %215 = vector.broadcast %cst_74 : f32 to vector<8x256xf32>
    %216 = arith.select %214, %212, %215 : vector<8x256xi1>, vector<8x256xf32>
    %217 = vector.extract_strided_slice %188 {offsets = [0, 143], sizes = [8, 256], strides = [1, 1]} : vector<8x512xf32> to vector<8x256xf32>
    %cst_75 = arith.constant 0.000000e+00 : f32
    %218 = vector.shape_cast %190 : vector<1x256xi1> to vector<1x256xi1>
    %219 = vector.broadcast %218 : vector<1x256xi1> to vector<8x256xi1>
    %220 = vector.broadcast %cst_75 : f32 to vector<8x256xf32>
    %221 = arith.select %219, %217, %220 : vector<8x256xi1>, vector<8x256xf32>
    %222 = vector.extract_strided_slice %188 {offsets = [0, 144], sizes = [8, 256], strides = [1, 1]} : vector<8x512xf32> to vector<8x256xf32>
    %223 = vector.extract_strided_slice %188 {offsets = [0, 145], sizes = [8, 256], strides = [1, 1]} : vector<8x512xf32> to vector<8x256xf32>
    %cst_76 = arith.constant 0.000000e+00 : f32
    %224 = vector.shape_cast %194 : vector<1x256xi1> to vector<1x256xi1>
    %225 = vector.broadcast %224 : vector<1x256xi1> to vector<8x256xi1>
    %226 = vector.broadcast %cst_76 : f32 to vector<8x256xf32>
    %227 = arith.select %225, %223, %226 : vector<8x256xi1>, vector<8x256xf32>
    %228 = tpu.concatenate %199, %200, %205, %210, %211, %216, %221, %222, %227 in 0 : vector<8x256xf32>, vector<8x256xf32>, vector<8x256xf32>, vector<8x256xf32>, vector<8x256xf32>, vector<8x256xf32>, vector<8x256xf32>, vector<8x256xf32>, vector<8x256xf32> -> vector<72x256xf32>
    %229 = arith.truncf %228 : vector<72x256xf32> to vector<72x256xbf16>
    %c0_77 = arith.constant 0 : index
    %c0_78 = arith.constant 0 : index
    %230 = vector.load %arg14[%c0_77, %c0_78] : memref<8x72xbf16, #tpu.memory_space<vmem>>, vector<8x72xbf16>
    %cst_79 = arith.constant dense<0.000000e+00> : vector<8x256xf32>
    %231 = tpu.matmul %230, %229, %cst_79 {dimension_numbers = #tpu.dot_dimension_numbers<[1], [0], [0], [1], [0, 0, 1, 1], [], []>} : vector<8x72xbf16>, vector<72x256xbf16>, vector<8x256xf32> -> vector<8x256xf32>
    %c0_80 = arith.constant 0 : index
    %c0_81 = arith.constant 0 : index
    %232 = vector.load %arg15[%c0_80, %c0_81] : memref<8x1xf32, #tpu.memory_space<vmem>>, vector<8x1xf32>
    %233 = vector.broadcast %232 : vector<8x1xf32> to vector<8x256xf32>
    %234 = arith.addf %231, %233 : vector<8x256xf32>
    %cst_82 = arith.constant 0.000000e+00 : f32
    %235 = vector.broadcast %cst_82 : f32 to vector<8x256xf32>
    %236 = arith.maximumf %234, %235 : vector<8x256xf32>
    %cst_83 = arith.constant 0.000000e+00 : f32
    %237 = vector.broadcast %cst_83 : f32 to vector<8x128xf32>
    %238 = tpu.concatenate %237, %236, %237 in 1 : vector<8x128xf32>, vector<8x256xf32>, vector<8x128xf32> -> vector<8x512xf32>
    %c1_i32_84 = arith.constant 1 : i32
    %239 = vector.broadcast %c1_i32_84 : i32 to vector<1x256xi32>
    %240 = arith.cmpi sge, %16, %239 : vector<1x256xi32>
    %c1_i32_85 = arith.constant 1 : i32
    %241 = vector.broadcast %c1_i32_85 : i32 to vector<1x256xi32>
    %242 = arith.addi %16, %241 : vector<1x256xi32>
    %c16_i32_86 = arith.constant 16 : i32
    %243 = vector.broadcast %c16_i32_86 : i32 to vector<1x256xi32>
    %244 = arith.cmpi slt, %242, %243 : vector<1x256xi32>
    %245 = vector.extract_strided_slice %238 {offsets = [0, 111], sizes = [8, 256], strides = [1, 1]} : vector<8x512xf32> to vector<8x256xf32>
    %cst_87 = arith.constant 0.000000e+00 : f32
    %246 = vector.shape_cast %240 : vector<1x256xi1> to vector<1x256xi1>
    %247 = vector.broadcast %246 : vector<1x256xi1> to vector<8x256xi1>
    %248 = vector.broadcast %cst_87 : f32 to vector<8x256xf32>
    %249 = arith.select %247, %245, %248 : vector<8x256xi1>, vector<8x256xf32>
    %250 = vector.extract_strided_slice %238 {offsets = [0, 112], sizes = [8, 256], strides = [1, 1]} : vector<8x512xf32> to vector<8x256xf32>
    %251 = vector.extract_strided_slice %238 {offsets = [0, 113], sizes = [8, 256], strides = [1, 1]} : vector<8x512xf32> to vector<8x256xf32>
    %cst_88 = arith.constant 0.000000e+00 : f32
    %252 = vector.shape_cast %244 : vector<1x256xi1> to vector<1x256xi1>
    %253 = vector.broadcast %252 : vector<1x256xi1> to vector<8x256xi1>
    %254 = vector.broadcast %cst_88 : f32 to vector<8x256xf32>
    %255 = arith.select %253, %251, %254 : vector<8x256xi1>, vector<8x256xf32>
    %256 = vector.extract_strided_slice %238 {offsets = [0, 127], sizes = [8, 256], strides = [1, 1]} : vector<8x512xf32> to vector<8x256xf32>
    %cst_89 = arith.constant 0.000000e+00 : f32
    %257 = vector.shape_cast %240 : vector<1x256xi1> to vector<1x256xi1>
    %258 = vector.broadcast %257 : vector<1x256xi1> to vector<8x256xi1>
    %259 = vector.broadcast %cst_89 : f32 to vector<8x256xf32>
    %260 = arith.select %258, %256, %259 : vector<8x256xi1>, vector<8x256xf32>
    %261 = vector.extract_strided_slice %238 {offsets = [0, 128], sizes = [8, 256], strides = [1, 1]} : vector<8x512xf32> to vector<8x256xf32>
    %262 = vector.extract_strided_slice %238 {offsets = [0, 129], sizes = [8, 256], strides = [1, 1]} : vector<8x512xf32> to vector<8x256xf32>
    %cst_90 = arith.constant 0.000000e+00 : f32
    %263 = vector.shape_cast %244 : vector<1x256xi1> to vector<1x256xi1>
    %264 = vector.broadcast %263 : vector<1x256xi1> to vector<8x256xi1>
    %265 = vector.broadcast %cst_90 : f32 to vector<8x256xf32>
    %266 = arith.select %264, %262, %265 : vector<8x256xi1>, vector<8x256xf32>
    %267 = vector.extract_strided_slice %238 {offsets = [0, 143], sizes = [8, 256], strides = [1, 1]} : vector<8x512xf32> to vector<8x256xf32>
    %cst_91 = arith.constant 0.000000e+00 : f32
    %268 = vector.shape_cast %240 : vector<1x256xi1> to vector<1x256xi1>
    %269 = vector.broadcast %268 : vector<1x256xi1> to vector<8x256xi1>
    %270 = vector.broadcast %cst_91 : f32 to vector<8x256xf32>
    %271 = arith.select %269, %267, %270 : vector<8x256xi1>, vector<8x256xf32>
    %272 = vector.extract_strided_slice %238 {offsets = [0, 144], sizes = [8, 256], strides = [1, 1]} : vector<8x512xf32> to vector<8x256xf32>
    %273 = vector.extract_strided_slice %238 {offsets = [0, 145], sizes = [8, 256], strides = [1, 1]} : vector<8x512xf32> to vector<8x256xf32>
    %cst_92 = arith.constant 0.000000e+00 : f32
    %274 = vector.shape_cast %244 : vector<1x256xi1> to vector<1x256xi1>
    %275 = vector.broadcast %274 : vector<1x256xi1> to vector<8x256xi1>
    %276 = vector.broadcast %cst_92 : f32 to vector<8x256xf32>
    %277 = arith.select %275, %273, %276 : vector<8x256xi1>, vector<8x256xf32>
    %278 = tpu.concatenate %249, %250, %255, %260, %261, %266, %271, %272, %277 in 0 : vector<8x256xf32>, vector<8x256xf32>, vector<8x256xf32>, vector<8x256xf32>, vector<8x256xf32>, vector<8x256xf32>, vector<8x256xf32>, vector<8x256xf32>, vector<8x256xf32> -> vector<72x256xf32>
    %279 = arith.truncf %278 : vector<72x256xf32> to vector<72x256xbf16>
    %c0_93 = arith.constant 0 : index
    %c0_94 = arith.constant 0 : index
    %280 = vector.load %arg16[%c0_93, %c0_94] : memref<8x72xbf16, #tpu.memory_space<vmem>>, vector<8x72xbf16>
    %cst_95 = arith.constant dense<0.000000e+00> : vector<8x256xf32>
    %281 = tpu.matmul %280, %279, %cst_95 {dimension_numbers = #tpu.dot_dimension_numbers<[1], [0], [0], [1], [0, 0, 1, 1], [], []>} : vector<8x72xbf16>, vector<72x256xbf16>, vector<8x256xf32> -> vector<8x256xf32>
    %c0_96 = arith.constant 0 : index
    %c0_97 = arith.constant 0 : index
    %282 = vector.load %arg17[%c0_96, %c0_97] : memref<8x1xf32, #tpu.memory_space<vmem>>, vector<8x1xf32>
    %283 = vector.broadcast %282 : vector<8x1xf32> to vector<8x256xf32>
    %284 = arith.addf %281, %283 : vector<8x256xf32>
    %cst_98 = arith.constant 0.000000e+00 : f32
    %285 = vector.broadcast %cst_98 : f32 to vector<8x256xf32>
    %286 = arith.maximumf %284, %285 : vector<8x256xf32>
    %cst_99 = arith.constant 0.000000e+00 : f32
    %287 = vector.broadcast %cst_99 : f32 to vector<8x128xf32>
    %288 = tpu.concatenate %287, %286, %287 in 1 : vector<8x128xf32>, vector<8x256xf32>, vector<8x128xf32> -> vector<8x512xf32>
    %c3_i32 = arith.constant 3 : i32
    %289 = vector.broadcast %c3_i32 : i32 to vector<1x256xi32>
    %290 = arith.cmpi sge, %16, %289 : vector<1x256xi32>
    %c3_i32_100 = arith.constant 3 : i32
    %291 = vector.broadcast %c3_i32_100 : i32 to vector<1x256xi32>
    %292 = arith.addi %16, %291 : vector<1x256xi32>
    %c16_i32_101 = arith.constant 16 : i32
    %293 = vector.broadcast %c16_i32_101 : i32 to vector<1x256xi32>
    %294 = arith.cmpi slt, %292, %293 : vector<1x256xi32>
    %295 = vector.extract_strided_slice %288 {offsets = [0, 77], sizes = [8, 256], strides = [1, 1]} : vector<8x512xf32> to vector<8x256xf32>
    %cst_102 = arith.constant 0.000000e+00 : f32
    %296 = vector.shape_cast %290 : vector<1x256xi1> to vector<1x256xi1>
    %297 = vector.broadcast %296 : vector<1x256xi1> to vector<8x256xi1>
    %298 = vector.broadcast %cst_102 : f32 to vector<8x256xf32>
    %299 = arith.select %297, %295, %298 : vector<8x256xi1>, vector<8x256xf32>
    %300 = vector.extract_strided_slice %288 {offsets = [0, 80], sizes = [8, 256], strides = [1, 1]} : vector<8x512xf32> to vector<8x256xf32>
    %301 = vector.extract_strided_slice %288 {offsets = [0, 83], sizes = [8, 256], strides = [1, 1]} : vector<8x512xf32> to vector<8x256xf32>
    %cst_103 = arith.constant 0.000000e+00 : f32
    %302 = vector.shape_cast %294 : vector<1x256xi1> to vector<1x256xi1>
    %303 = vector.broadcast %302 : vector<1x256xi1> to vector<8x256xi1>
    %304 = vector.broadcast %cst_103 : f32 to vector<8x256xf32>
    %305 = arith.select %303, %301, %304 : vector<8x256xi1>, vector<8x256xf32>
    %306 = vector.extract_strided_slice %288 {offsets = [0, 125], sizes = [8, 256], strides = [1, 1]} : vector<8x512xf32> to vector<8x256xf32>
    %cst_104 = arith.constant 0.000000e+00 : f32
    %307 = vector.shape_cast %290 : vector<1x256xi1> to vector<1x256xi1>
    %308 = vector.broadcast %307 : vector<1x256xi1> to vector<8x256xi1>
    %309 = vector.broadcast %cst_104 : f32 to vector<8x256xf32>
    %310 = arith.select %308, %306, %309 : vector<8x256xi1>, vector<8x256xf32>
    %311 = vector.extract_strided_slice %288 {offsets = [0, 128], sizes = [8, 256], strides = [1, 1]} : vector<8x512xf32> to vector<8x256xf32>
    %312 = vector.extract_strided_slice %288 {offsets = [0, 131], sizes = [8, 256], strides = [1, 1]} : vector<8x512xf32> to vector<8x256xf32>
    %cst_105 = arith.constant 0.000000e+00 : f32
    %313 = vector.shape_cast %294 : vector<1x256xi1> to vector<1x256xi1>
    %314 = vector.broadcast %313 : vector<1x256xi1> to vector<8x256xi1>
    %315 = vector.broadcast %cst_105 : f32 to vector<8x256xf32>
    %316 = arith.select %314, %312, %315 : vector<8x256xi1>, vector<8x256xf32>
    %317 = vector.extract_strided_slice %288 {offsets = [0, 173], sizes = [8, 256], strides = [1, 1]} : vector<8x512xf32> to vector<8x256xf32>
    %cst_106 = arith.constant 0.000000e+00 : f32
    %318 = vector.shape_cast %290 : vector<1x256xi1> to vector<1x256xi1>
    %319 = vector.broadcast %318 : vector<1x256xi1> to vector<8x256xi1>
    %320 = vector.broadcast %cst_106 : f32 to vector<8x256xf32>
    %321 = arith.select %319, %317, %320 : vector<8x256xi1>, vector<8x256xf32>
    %322 = vector.extract_strided_slice %288 {offsets = [0, 176], sizes = [8, 256], strides = [1, 1]} : vector<8x512xf32> to vector<8x256xf32>
    %323 = vector.extract_strided_slice %288 {offsets = [0, 179], sizes = [8, 256], strides = [1, 1]} : vector<8x512xf32> to vector<8x256xf32>
    %cst_107 = arith.constant 0.000000e+00 : f32
    %324 = vector.shape_cast %294 : vector<1x256xi1> to vector<1x256xi1>
    %325 = vector.broadcast %324 : vector<1x256xi1> to vector<8x256xi1>
    %326 = vector.broadcast %cst_107 : f32 to vector<8x256xf32>
    %327 = arith.select %325, %323, %326 : vector<8x256xi1>, vector<8x256xf32>
    %328 = tpu.concatenate %299, %300, %305, %310, %311, %316, %321, %322, %327 in 0 : vector<8x256xf32>, vector<8x256xf32>, vector<8x256xf32>, vector<8x256xf32>, vector<8x256xf32>, vector<8x256xf32>, vector<8x256xf32>, vector<8x256xf32>, vector<8x256xf32> -> vector<72x256xf32>
    %329 = arith.truncf %328 : vector<72x256xf32> to vector<72x256xbf16>
    %c0_108 = arith.constant 0 : index
    %c0_109 = arith.constant 0 : index
    %330 = vector.load %arg18[%c0_108, %c0_109] : memref<8x72xbf16, #tpu.memory_space<vmem>>, vector<8x72xbf16>
    %cst_110 = arith.constant dense<0.000000e+00> : vector<8x256xf32>
    %331 = tpu.matmul %330, %329, %cst_110 {dimension_numbers = #tpu.dot_dimension_numbers<[1], [0], [0], [1], [0, 0, 1, 1], [], []>} : vector<8x72xbf16>, vector<72x256xbf16>, vector<8x256xf32> -> vector<8x256xf32>
    %c0_111 = arith.constant 0 : index
    %c0_112 = arith.constant 0 : index
    %332 = vector.load %arg19[%c0_111, %c0_112] : memref<8x1xf32, #tpu.memory_space<vmem>>, vector<8x1xf32>
    %333 = vector.broadcast %332 : vector<8x1xf32> to vector<8x256xf32>
    %334 = arith.addf %331, %333 : vector<8x256xf32>
    %c0_113 = arith.constant 0 : index
    %c0_114 = arith.constant 0 : index
    %335 = vector.load %arg20[%c0_113, %c0_114] : memref<32x8xbf16, #tpu.memory_space<vmem>>, vector<32x8xbf16>
    %336 = arith.truncf %74 : vector<8x256xf32> to vector<8x256xbf16>
    %cst_115 = arith.constant dense<0.000000e+00> : vector<32x256xf32>
    %337 = tpu.matmul %335, %336, %cst_115 {dimension_numbers = #tpu.dot_dimension_numbers<[1], [0], [0], [1], [0, 0, 1, 1], [], []>} : vector<32x8xbf16>, vector<8x256xbf16>, vector<32x256xf32> -> vector<32x256xf32>
    %c0_116 = arith.constant 0 : index
    %c0_117 = arith.constant 0 : index
    %338 = vector.load %arg21[%c0_116, %c0_117] : memref<32x8xbf16, #tpu.memory_space<vmem>>, vector<32x8xbf16>
    %339 = arith.truncf %179 : vector<8x256xf32> to vector<8x256xbf16>
    %cst_118 = arith.constant dense<0.000000e+00> : vector<32x256xf32>
    %340 = tpu.matmul %338, %339, %cst_118 {dimension_numbers = #tpu.dot_dimension_numbers<[1], [0], [0], [1], [0, 0, 1, 1], [], []>} : vector<32x8xbf16>, vector<8x256xbf16>, vector<32x256xf32> -> vector<32x256xf32>
    %341 = arith.addf %337, %340 : vector<32x256xf32>
    %c0_119 = arith.constant 0 : index
    %c0_120 = arith.constant 0 : index
    %342 = vector.load %arg22[%c0_119, %c0_120] : memref<32x8xbf16, #tpu.memory_space<vmem>>, vector<32x8xbf16>
    %343 = arith.truncf %334 : vector<8x256xf32> to vector<8x256xbf16>
    %cst_121 = arith.constant dense<0.000000e+00> : vector<32x256xf32>
    %344 = tpu.matmul %342, %343, %cst_121 {dimension_numbers = #tpu.dot_dimension_numbers<[1], [0], [0], [1], [0, 0, 1, 1], [], []>} : vector<32x8xbf16>, vector<8x256xbf16>, vector<32x256xf32> -> vector<32x256xf32>
    %345 = arith.addf %341, %344 : vector<32x256xf32>
    %c0_122 = arith.constant 0 : index
    %c0_123 = arith.constant 0 : index
    %346 = vector.load %arg23[%c0_122, %c0_123] : memref<32x32xbf16, #tpu.memory_space<vmem>>, vector<32x32xbf16>
    %cst_124 = arith.constant dense<0.000000e+00> : vector<32x256xf32>
    %347 = tpu.matmul %346, %19, %cst_124 {dimension_numbers = #tpu.dot_dimension_numbers<[1], [0], [0], [1], [0, 0, 1, 1], [], []>} : vector<32x32xbf16>, vector<32x256xbf16>, vector<32x256xf32> -> vector<32x256xf32>
    %348 = arith.addf %345, %347 : vector<32x256xf32>
    %c0_125 = arith.constant 0 : index
    %c0_126 = arith.constant 0 : index
    %349 = vector.load %arg24[%c0_125, %c0_126] : memref<32x1xf32, #tpu.memory_space<vmem>>, vector<32x1xf32>
    %350 = vector.broadcast %349 : vector<32x1xf32> to vector<32x256xf32>
    %351 = arith.addf %348, %350 : vector<32x256xf32>
    %cst_127 = arith.constant 0.000000e+00 : f32
    %352 = vector.broadcast %cst_127 : f32 to vector<32x256xf32>
    %353 = arith.maximumf %351, %352 : vector<32x256xf32>
    %c0_128 = arith.constant 0 : index
    %c0_129 = arith.constant 0 : index
    %c0_130 = arith.constant 0 : index
    %354 = vector.load %arg25[%c0_128, %c0_129, %c0_130] : memref<1x32x256xf32, #tpu.memory_space<vmem>>, vector<1x32x256xf32>
    %355 = vector.shape_cast %354 : vector<1x32x256xf32> to vector<32x256xf32>
    %356 = vector.shape_cast %353 : vector<32x256xf32> to vector<1x32x256xf32>
    tpu.vector_store %arg25[%c0_128, %c0_129, %c0_130], %356 {strides = array<i32>} : memref<1x32x256xf32, #tpu.memory_space<vmem>>, vector<1x32x256xf32>,
    return
  }
  func.func @transform_0(%arg0: i32) -> (i32, i32, i32) {
    %c0_i32 = arith.constant 0 : i32
    %c0_i32_0 = arith.constant 0 : i32
    %c0_i32_1 = arith.constant 0 : i32
    return %arg0, %c0_i32, %c0_i32_0 : i32, i32, i32
  }
  func.func @transform_1(%arg0: i32) -> (i32, i32) {
    %c0_i32 = arith.constant 0 : i32
    %c0_i32_0 = arith.constant 0 : i32
    %c0_i32_1 = arith.constant 0 : i32
    return %c0_i32, %c0_i32_0 : i32, i32
  }
  func.func @transform_2(%arg0: i32) -> (i32, i32) {
    %c0_i32 = arith.constant 0 : i32
    %c0_i32_0 = arith.constant 0 : i32
    %c0_i32_1 = arith.constant 0 : i32
    return %c0_i32, %c0_i32_0 : i32, i32
  }
  func.func @transform_3(%arg0: i32) -> (i32, i32) {
    %c0_i32 = arith.constant 0 : i32
    %c0_i32_0 = arith.constant 0 : i32
    %c0_i32_1 = arith.constant 0 : i32
    return %c0_i32, %c0_i32_0 : i32, i32
  }
  func.func @transform_4(%arg0: i32) -> (i32, i32) {
    %c0_i32 = arith.constant 0 : i32
    %c0_i32_0 = arith.constant 0 : i32
    %c0_i32_1 = arith.constant 0 : i32
    return %c0_i32, %c0_i32_0 : i32, i32
  }
  func.func @transform_5(%arg0: i32) -> (i32, i32) {
    %c0_i32 = arith.constant 0 : i32
    %c0_i32_0 = arith.constant 0 : i32
    %c0_i32_1 = arith.constant 0 : i32
    return %c0_i32, %c0_i32_0 : i32, i32
  }
  func.func @transform_6(%arg0: i32) -> (i32, i32) {
    %c0_i32 = arith.constant 0 : i32
    %c0_i32_0 = arith.constant 0 : i32
    %c0_i32_1 = arith.constant 0 : i32
    return %c0_i32, %c0_i32_0 : i32, i32
  }
  func.func @transform_7(%arg0: i32) -> (i32, i32) {
    %c0_i32 = arith.constant 0 : i32
    %c0_i32_0 = arith.constant 0 : i32
    %c0_i32_1 = arith.constant 0 : i32
    return %c0_i32, %c0_i32_0 : i32, i32
  }
  func.func @transform_8(%arg0: i32) -> (i32, i32) {
    %c0_i32 = arith.constant 0 : i32
    %c0_i32_0 = arith.constant 0 : i32
    %c0_i32_1 = arith.constant 0 : i32
    return %c0_i32, %c0_i32_0 : i32, i32
  }
  func.func @transform_9(%arg0: i32) -> (i32, i32) {
    %c0_i32 = arith.constant 0 : i32
    %c0_i32_0 = arith.constant 0 : i32
    %c0_i32_1 = arith.constant 0 : i32
    return %c0_i32, %c0_i32_0 : i32, i32
  }
  func.func @transform_10(%arg0: i32) -> (i32, i32) {
    %c0_i32 = arith.constant 0 : i32
    %c0_i32_0 = arith.constant 0 : i32
    %c0_i32_1 = arith.constant 0 : i32
    return %c0_i32, %c0_i32_0 : i32, i32
  }
  func.func @transform_11(%arg0: i32) -> (i32, i32) {
    %c0_i32 = arith.constant 0 : i32
    %c0_i32_0 = arith.constant 0 : i32
    %c0_i32_1 = arith.constant 0 : i32
    return %c0_i32, %c0_i32_0 : i32, i32
  }
  func.func @transform_12(%arg0: i32) -> (i32, i32) {
    %c0_i32 = arith.constant 0 : i32
    %c0_i32_0 = arith.constant 0 : i32
    %c0_i32_1 = arith.constant 0 : i32
    return %c0_i32, %c0_i32_0 : i32, i32
  }
  func.func @transform_13(%arg0: i32) -> (i32, i32) {
    %c0_i32 = arith.constant 0 : i32
    %c0_i32_0 = arith.constant 0 : i32
    %c0_i32_1 = arith.constant 0 : i32
    return %c0_i32, %c0_i32_0 : i32, i32
  }
  func.func @transform_14(%arg0: i32) -> (i32, i32) {
    %c0_i32 = arith.constant 0 : i32
    %c0_i32_0 = arith.constant 0 : i32
    %c0_i32_1 = arith.constant 0 : i32
    return %c0_i32, %c0_i32_0 : i32, i32
  }
  func.func @transform_15(%arg0: i32) -> (i32, i32) {
    %c0_i32 = arith.constant 0 : i32
    %c0_i32_0 = arith.constant 0 : i32
    %c0_i32_1 = arith.constant 0 : i32
    return %c0_i32, %c0_i32_0 : i32, i32
  }
  func.func @transform_16(%arg0: i32) -> (i32, i32) {
    %c0_i32 = arith.constant 0 : i32
    %c0_i32_0 = arith.constant 0 : i32
    %c0_i32_1 = arith.constant 0 : i32
    return %c0_i32, %c0_i32_0 : i32, i32
  }
  func.func @transform_17(%arg0: i32) -> (i32, i32) {
    %c0_i32 = arith.constant 0 : i32
    %c0_i32_0 = arith.constant 0 : i32
    %c0_i32_1 = arith.constant 0 : i32
    return %c0_i32, %c0_i32_0 : i32, i32
  }
  func.func @transform_18(%arg0: i32) -> (i32, i32) {
    %c0_i32 = arith.constant 0 : i32
    %c0_i32_0 = arith.constant 0 : i32
    %c0_i32_1 = arith.constant 0 : i32
    return %c0_i32, %c0_i32_0 : i32, i32
  }
  func.func @transform_19(%arg0: i32) -> (i32, i32) {
    %c0_i32 = arith.constant 0 : i32
    %c0_i32_0 = arith.constant 0 : i32
    %c0_i32_1 = arith.constant 0 : i32
    return %c0_i32, %c0_i32_0 : i32, i32
  }
  func.func @transform_20(%arg0: i32) -> (i32, i32) {
    %c0_i32 = arith.constant 0 : i32
    %c0_i32_0 = arith.constant 0 : i32
    %c0_i32_1 = arith.constant 0 : i32
    return %c0_i32, %c0_i32_0 : i32, i32
  }
  func.func @transform_21(%arg0: i32) -> (i32, i32) {
    %c0_i32 = arith.constant 0 : i32
    %c0_i32_0 = arith.constant 0 : i32
    %c0_i32_1 = arith.constant 0 : i32
    return %c0_i32, %c0_i32_0 : i32, i32
  }
  func.func @transform_22(%arg0: i32) -> (i32, i32) {
    %c0_i32 = arith.constant 0 : i32
    %c0_i32_0 = arith.constant 0 : i32
    %c0_i32_1 = arith.constant 0 : i32
    return %c0_i32, %c0_i32_0 : i32, i32
  }
  func.func @transform_23(%arg0: i32) -> (i32, i32) {
    %c0_i32 = arith.constant 0 : i32
    %c0_i32_0 = arith.constant 0 : i32
    %c0_i32_1 = arith.constant 0 : i32
    return %c0_i32, %c0_i32_0 : i32, i32
  }
  func.func @transform_24(%arg0: i32) -> (i32, i32, i32) {
    %c0_i32 = arith.constant 0 : i32
    %c0_i32_0 = arith.constant 0 : i32
    %c0_i32_1 = arith.constant 0 : i32
    return %arg0, %c0_i32, %c0_i32_0 : i32, i32, i32
  }
}

</mosaic_0001>

<bundles_post_ra>
// kernel: tpu_custom_call.1
= control target key start
LH: loop header
LB: loop body
LE: loop exit
PB: predicated region body
PF: predicated region fallthrough
CT: control target
= control target key end

     0   :  { %s3906_s0 = inlined_call_operand.hbm [shape: f32[2,32,256], index: 0, kind: input, shape index: {}]   ;;  %s3907_s1 = inlined_call_operand.vmem [shape: bf16[8,32], index: 1, kind: input, shape index: {}]   ;;  %s3908_s2 = inlined_call_operand.vmem [shape: f32[8,1], index: 2, kind: input, shape index: {}]   ;;  %s3909_s3 = inlined_call_operand.vmem [shape: bf16[8,72], index: 3, kind: input, shape index: {}]   ;;  %s3910_s4 = inlined_call_operand.vmem [shape: f32[8,1], index: 4, kind: input, shape index: {}]   ;;  %s3911_s5 = inlined_call_operand.vmem [shape: bf16[8,32], index: 5, kind: input, shape index: {}]   ;;  %s3912_s6 = inlined_call_operand.vmem [shape: f32[8,1], index: 6, kind: input, shape index: {}]   ;;  %s3913_s7 = inlined_call_operand.vmem [shape: bf16[8,72], index: 7, kind: input, shape index: {}]   ;;  %s3914_s8 = inlined_call_operand.vmem [shape: f32[8,1], index: 8, kind: input, shape index: {}]   ;;  %s3915_s9 = inlined_call_operand.vmem [shape: bf16[8,72], index: 9, kind: input, shape index: {}]   ;;  %s3916_s10 = inlined_call_operand.vmem [shape: f32[8,1], index: 10, kind: input, shape index: {}]   ;;  %s3917_s11 = inlined_call_operand.vmem [shape: bf16[8,32], index: 11, kind: input, shape index: {}]   ;;  %s3918_s12 = inlined_call_operand.vmem [shape: f32[8,1], index: 12, kind: input, shape index: {}]   ;;  %s3919_s13 = inlined_call_operand.vmem [shape: bf16[8,72], index: 13, kind: input, shape index: {}]   ;;  %s3920_s14 = inlined_call_operand.vmem [shape: f32[8,1], index: 14, kind: input, shape index: {}]   ;;  %s3921_s15 = inlined_call_operand.vmem [shape: bf16[8,72], index: 15, kind: input, shape index: {}]   ;;  %s3922_s16 = inlined_call_operand.vmem [shape: f32[8,1], index: 16, kind: input, shape index: {}]   ;;  %s3923_s17 = inlined_call_operand.vmem [shape: bf16[8,72], index: 17, kind: input, shape index: {}]   ;;  %s3924_s18 = inlined_call_operand.vmem [shape: f32[8,1], index: 18, kind: input, shape index: {}]   ;;  %s3925_s19 = inlined_call_operand.vmem [shape: bf16[32,8], index: 19, kind: input, shape index: {}]   ;;  %s3926_s20 = inlined_call_operand.vmem [shape: bf16[32,8], index: 20, kind: input, shape index: {}]   ;;  %s3927_s21 = inlined_call_operand.vmem [shape: bf16[32,8], index: 21, kind: input, shape index: {}]   ;;  %s3928_s22 = inlined_call_operand.vmem [shape: bf16[32,32], index: 22, kind: input, shape index: {}]   ;;  %s3929_s23 = inlined_call_operand.vmem [shape: f32[32,1], index: 23, kind: input, shape index: {}]   ;;  %s3930_s24 = inlined_call_operand.hbm [shape: f32[2,32,256], index: 24, kind: output, shape index: {}]  }
   0x1   :  { %3972 = sst [smem:[#allocation15_spill]] %s3906_s0 }
   0x2   :  { %3973 = sst [smem:[#allocation16_spill]] %s3907_s1 }
   0x3   :  { %3974 = sst [smem:[#allocation17_spill]] %s3908_s2 }
   0x4   :  { %3975 = sst [smem:[#allocation18_spill]] %s3909_s3 }
   0x5   :  { %3976 = sst [smem:[#allocation19_spill]] %s3910_s4 }
   0x6   :  { %3977 = sst [smem:[#allocation20_spill]] %s3911_s5 }
   0x7   :  { %3978 = sst [smem:[#allocation21_spill]] %s3912_s6 }
   0x8   :  { %3979 = sst [smem:[#allocation22_spill]] %s3913_s7 }
   0x9   :  { %3980 = sst [smem:[#allocation23_spill]] %s3914_s8 }
   0xa   :  { %3981 = sst [smem:[#allocation24_spill]] %s3915_s9 }
   0xb   :  { %3982 = sst [smem:[#allocation25_spill]] %s3916_s10 }
   0xc   :  { %3983 = sst [smem:[#allocation26_spill]] %s3917_s11 }
   0xd   :  { %3984 = sst [smem:[#allocation27_spill]] %s3925_s19 }
   0xe   :  { %3985 = sst [smem:[#allocation28_spill]] %s3927_s21 }
   0xf   :  { %3986 = sst [smem:[#allocation29_spill]] %s3928_s22 }
  0x10   :  { %3987 = sst [smem:[#allocation30_spill]] %s3930_s24 }
  0x11   :  { %29 = vsyncpa [#allocation3], 0 }
  0x12   :  { %31 = vsyncpa [#allocation3 + $0x1], 0 }
  0x13   :  { %32 = vsyncpa [#allocation4], 0 }
  0x14   :  { %34 = vsyncpa [#allocation4 + $0x1], 0  ;;  %s3031_s5 = smov 0   ;;  %s3033_s26 = smov 0  }
  0x15   :  { %s3035_s27 = smov 0   ;;  %s3037_s28 = smov 0  }
  0x16 LB: > { %3988 = sst [smem:[#allocation8_spill]] %s2862_s5  ;;  %s3052_s6 = sadd.s32 4294967295, %s2874_s28   ;;  %s2874_s28 = sphi %s3037_s28, %s4121_s28   ;;  %s2870_s27 = sphi %s3035_s27, %s4123_s27   ;;  %s2866_s26 = sphi %s3033_s26, %s4125_s26   ;;  %s2862_s5 = sphi %s3031_s5, %s4124_s5  }
  0x17   : > { %3989 = sst [smem:[#allocation9_spill]] %s2870_s27  ;;  %s2225_s2 = sadd.s32 4294967294, %s2874_s28  }
  0x18   : > { %3990 = sst [smem:[#allocation10_spill]] %s3052_s6  ;;  %s3056_s29 = sadd.s32 1, %s2874_s28  }
  0x19   : > { %3991 = sst [smem:[#allocation11_spill]] %s3056_s29  ;;  %s47_s0 = sadd.s32 1, %s2870_s27 }
  0x1a   : > { %s44_s7 = ssub.s32 %s2874_s28, %s3056_s29  ;;  %p54_p0 = scmp.ne.s32.totalorder %s2870_s27, %s2866_s26 }
  0x1b   : > { %p45_p1 = scmp.eq.s32.totalorder %s44_s7, 0  ;;  %p55_p2 = scmp.eq.s32.totalorder %s2874_s28, 0 }
  0x1c   : > { %p60_p3 = scmp.ne.s32.totalorder %s2866_s26, %s2862_s5  ;;  %p61_p4 = scmp.eq.s32.totalorder %s3052_s6, 0 }
  0x1d   : > { %s3068_s30 = scalar_select %p45_p1, %s2870_s27, %s47_s0  }
  0x1e   : > { %p3070_p5 = por %p55_p2, %p54_p0  ;;  %p3074_p6 = por %p61_p4, %p60_p3 }
  0x1f   : > { %3992 = sst [smem:[#allocation12_spill]] %s3068_s30  ;;  %p567_p7 = scmp.eq.s32.totalorder %s3052_s6, 1 }
  0x20   : > { %p573_p8 = scmp.eq.s32.totalorder %s2225_s2, 1  ;;  %p2471_p10 = scmp.lt.s32.totalorder %s2874_s28, 2 }
  0x21   : > { %p3081_p11 = por %p567_p7, %p54_p0  ;;  %s662_s1 = sand.u32 1, %s2870_s27  }
  0x22   : > { %p3085_p12 = por %p573_p8, %p60_p3  ;;  %s2449_s0 = sshll.u32 %s2874_s28, 6 }
  0x23   : > { %s3995_s8 = scalar_select %p3081_p11, 1, 0 }
  0x24   : > { %s3997_s4 = scalar_select %p3085_p12, 1, 0 }
  0x25   : > { %3996 = sst [smem:[#allocation13_spill]] %s3995_s8  ;;  %s2228_s7 = sshll.u32 %s662_s1, 6 }
  0x26   : > { %3998 = sst [smem:[#allocation14_spill]] %s3997_s4  ;;  %s666_s2 = scalar_lea.vmem [#allocation2], %s2228_s7 }
  0x27   : > { %s3999_s5 = sld [smem:[#allocation15_spill]]  ;;  %s674_s22 = sshll.u32 %s666_s2, 4  ;;  %s675_s22 = int_to_ptr.vmem [resolvable:$true] %s674_s22 }
  0x28   : > { %p3096_p13 = pnand %p2471_p10, %p3070_p5  ;;  %p2231_p0 = scmp.ge.s32.totalorder %s2874_s28, 1 }
  0x29   : > { %p682_p1 = scmp.lt.s32.totalorder %s2874_s28, 3  ;;  %s663_s27 = scalar_lea.sflag [#allocation3], %s662_s1 }
  0x2a   : > { %p2782_p3 = pneg %p3096_p13 }
  0x2d   : > { %s4000_s24 = smov %s3999_s5  ;;  %s671_s6 = scalar_lea.hbm %s3999_s5, %s2449_s0 }
  0x2e   : > { %s672_s21 = sshll.u32 %s671_s6, 4  ;;  %s2785_s29 = scalar_lea.hbm %s4000_s24, 128  ;;  %s673_s21 = int_to_ptr.hbm [resolvable:$true] %s672_s21 }
  0x2f   : > { %s2778_s4 = sshra.s32 %s673_s21, 4  ;;  %s2779_s4 = int_to_ptr.hbm [resolvable:$true] %s2778_s4 }
  0x30   : > { %s2780_s8 = scalar_lea.hbm %s2779_s4, 64  ;;  %p2786_p5 = scmp.lt.s32.totalorder %s2779_s4, %s4000_s24 }
  0x31   : > { %p2781_p2 = scmp.ne.s32.totalorder %s2779_s4, %s2780_s8  ;;  %p2787_p8 = scmp.lt.s32.totalorder %s2785_s29, %s2780_s8 }
  0x33   : > { %p2783_p4 = pnand %p2782_p3, %p2781_p2  ;;  %p2788_p10 = por %p2787_p8, %p2786_p5 }
  0x35   : > { %p2784_p7 = pneg %p2783_p4 }
  0x37   : > { %p2789_p9 = pnand %p2788_p10, %p2784_p7 }
  0x39   : > { %2792 = shalt.err (!%p2789_p9)
}
  0x3a   : > { %s2876_s1 = smov 256   ;;  %s2877_s0 = smov 16  }
  0x3b   : > { %2466 = dma.hbm_to_vmem [thread:$0]  (!%p3096_p13), %s673_s21, 1024, %s675_s22, %s663_s27, %s2876_s1, %s2876_s1, %s2877_s0  }
  0x3c   : > { %p683_p2 = pnand %p2231_p0, %p682_p1 }
  0x3d   : > { %s3117_s7 = sand.u32 (!%p683_p2), 1, %s2866_s26  }
  0x3e   : > { %686 = sbr.rel (%p683_p2) target bundleno = 1572 (0x624), region = 116  ;;  %s3951_s8 = sshll.u32 (!%p683_p2), %s3117_s7, 6 }
  0x3f   : > { %s689_s4 = scalar_lea.sflag (!%p683_p2), [#allocation3], %s3117_s7  ;;  %s692_s2 = scalar_lea.vmem (!%p683_p2), [#allocation2], %s3951_s8 }
  0x43   : > { %2853 = dma.done.wait (%p3074_p6), %s689_s4, 1024  }
  0x44   : > { %2855 = vsyncadd (%p3074_p6), %s689_s4, 4294966272  ;;  %v2878_v0 = vmov 0   ;;  %v790_v1 = vld [vmem:[%s692_s2 + $0x20] sm:$0xff]  ;;  %v792_v2 = vld [vmem:[%s692_s2 + $0x30] sm:$0xff]  ;;  %s4002_s22 = sld [smem:[#allocation17_spill]]  ;;  %vm3944_vm0 = vcmask 261120   ;;  %v759_v43 = vlaneseq }
  0x45   : > { %2535 = vset.pattern.permute.xlu0 %v2878_v0  ;;  %2616 = vset.pattern.permute.xlu2 %v2878_v0  ;;  %v791_v3 = vld [vmem:[%s692_s2 + $0x28] sm:$0xff]  ;;  %v3127_v4 = vpack.c.bf16 %v792_v2, %v790_v1  ;;  %v793_v5 = vld [vmem:[%s692_s2 + $0x38] sm:$0xff]  ;;  %v786_v6 = vld [vmem:[%s692_s2] sm:$0xff]  ;;  %s4003_s5 = sld [smem:[#allocation16_spill]]  ;;  %s2879_s4 = smov 112   ;;  %v2882_v27 = vmov 0.0  }
  0x46   : > { %2697 = vset.pattern.permute.xlu1 %v2878_v0  ;;  %v788_v7 = vld [vmem:[%s692_s2 + $0x10] sm:$0xff]  ;;  %v3129_v8 = vpack.c.bf16 %v793_v5, %v791_v3  ;;  %v787_v9 = vld [vmem:[%s692_s2 + $0x8] sm:$0xff]  ;;  %v789_v10 = vld [vmem:[%s692_s2 + $0x18] sm:$0xff]  ;;  %s4004_s30 = sld [smem:[#allocation21_spill]]  ;;  %s2880_s2 = smov 113   ;;  %v760_v45 = vand.u32 127, %v759_v43 }
  0x47   : > { %815 = vmatpush.bf16.msra.mxu0 %v3127_v4  ;;  %v3132_v11 = vpack.c.bf16 %v788_v7, %v786_v6  ;;  %v3138_v13 = vpack.c.bf16 %v789_v10, %v787_v9  ;;  %s4005_s0 = sld [smem:[#allocation20_spill]]  ;;  %s2881_s19 = smov 111   ;;  %v1346_v41 = vld [vmem:[%s3918_s12] sm:$0xff]  ;;  %vm3963_vm1 = vcmask 908288   ;;  %vm3947_vm3 = vcmask 1043456  }
  0x48   : > { %828 = vmatpush.bf16.msra.mxu1 %v3129_v8  ;;  %s3952_s21 = smov 1   ;;  %s2885_s27 = smov 15   ;;  %v3216_v46 = vand.u32 15, %v760_v45  ;;  %vm3961_vm4 = vcmask 916480   ;;  %vm3950_vm5 = vcmask 924672   ;;  %vm3960_vm7 = vcmask 1039360  }
  0x49   : > { %s2886_s25 = smov 17   ;;  %vm3948_vm8 = vmmov 1   ;;  %vm3959_vm10 = vcmask 121856   ;;  %vm3958_vm11 = vcmask 7168   ;;  %vm3956_vm13 = vcmask 138240   ;;  %s4012_s1 = sld [smem:[#allocation18_spill]] }
  0x4a   : > { %v799_v12 = vld [vmem:[%s4002_s22] sm:$0xff]  ;;  %s2884_s22 = smov 127   ;;  %v3221_v48 = vadd.s32 1, %v3216_v46  ;;  %vm837_vm6 = vcmp.ge.s32.totalorder %v3216_v46, 1  ;;  %vm3957_vm15 = vcmask 130048   ;;  %s4021_s29 = sld [smem:[#allocation23_spill]] }
  0x4b   : > { %802 = vperm.xlu0 %2535, %v799_v12   ;;  %816 = vmatpush.bf16.msra.mxu0 %v3132_v11  ;;  %v798_v14 = vld [vmem:[%s4003_s5] sm:$0xf]  ;;  %s3954_s5 = smov 16   ;;  %vm3258_vm9 = vmpackc.low %vm3948_vm8, %vm837_vm6  ;;  %s2890_s3 = smov 94  }
  0x4c   : > { %829 = vmatpush.bf16.msra.mxu1 %v3138_v13  ;;  %v1009_v15 = vld [vmem:[%s4004_s30] sm:$0xff]  ;;  %vm3946_vm2 = vcmp.lt.s32.totalorder %v3221_v48, 16  ;;  %s2889_s30 = smov 96   ;;  %s2892_s8 = smov 126  }
  0x4d   : > { %v1008_v16 = vld [vmem:[%s4005_s0] sm:$0xf]  ;;  %vm3278_vm12 = vmpackc.low %vm3946_vm2, %vm3948_vm8  ;;  %s4024_s11 = sld [smem:[#allocation26_spill]]  ;;  %s2895_s0 = smov 34  }
  0x4e   : > { %2234 = vmatmul.msk.bf16.vlgmr.msra.gmra.mxu0 %vm3944_vm0, %v798_v14  ;;  %vm3309_vm14 = vmpackc.low %vm837_vm6, %vm3946_vm2  ;;  %vm3945_vm6 = vcmask 588800   ;;  %s4040_s9 = sld [smem:[#allocation24_spill]]  ;;  %s2902_s6 = smov 45  }
  0x4f   : > { %1024 = vmatpush.bf16.msrb.mxu0 %v3127_v4  ;;  %2235 = vmatmul.msk.bf16.vlgmr.msra.gmra.mxu1 %vm3944_vm0, %v798_v14  ;;  %s4089_s10 = sld [smem:[#allocation25_spill]] }
  0x50   : > { %1037 = vmatpush.bf16.msrb.mxu1 %v3129_v8 }
  0x53   : > { %1012 = vperm.xlu0 %2535, %v1009_v15   ;;  %1025 = vmatpush.bf16.msrb.mxu0 %v3132_v11 }
  0x54   : > { %1038 = vmatpush.bf16.msrb.mxu1 %v3138_v13 }
  0x5e   : > { %2262 = vmatmul.msk.bf16.vlgmr.msrb.gmra.mxu0 %vm3944_vm0, %v1008_v16 }
  0x5f   : > { %2263 = vmatmul.msk.bf16.vlgmr.msrb.gmra.mxu1 %vm3944_vm0, %v1008_v16  ;;  %v761_v16 = vadd.s32 128, %v760_v45 }
  0xbd   : > { %v803_v17 = vpop.permute.xlu0 %802 }
  0xc5   : > { %v1013_v29 = vpop.permute.xlu0 %1012 }
  0xcb   : > { %v818_v18 = vpop.f32.mrf.mxu0 }
  0xcc   : > { %v819_v19 = vadd.f32 %v818_v18, %v803_v17  ;;  %v831_v20 = vpop.f32.mrf.mxu1 }
  0xcd   : > { %v832_v21 = vadd.f32 %v831_v20, %v803_v17 }
  0xce   : > { %v3159_v22 = vmax.f32 %v819_v19, 0.0 }
  0xcf   : > { %v3161_v23 = vmax.f32 %v832_v21, 0.0 }
  0xd0   : > { %v2561_v28 = vpack.i.bf16 %v3159_v22, %v2882_v27 }
  0xd1   : > { %v2546_v24 = vpack.i.bf16 %v3161_v23, %v3159_v22 }
  0xd3   : > { %2547 = vrot.lane.b32.xlu0 %v2546_v24, %s2879_s4  ;;  %2542 = vrot.lane.b32.xlu2 %v2546_v24, %s2880_s2  ;;  %v820_v25 = vpop.f32.mrf.mxu0 }
  0xd4   : > { %2537 = vrot.lane.b32.xlu1 %v2546_v24, %s2881_s19  ;;  %v833_v26 = vpop.f32.mrf.mxu1 }
  0xdb   : > { %2562 = vrot.lane.b32.xlu0 %v2561_v28, %s3952_s21  ;;  %2552 = vrot.lane.b32.xlu2 %v2546_v24, %s2884_s22  ;;  %v1027_v30 = vpop.f32.mrf.mxu0 }
  0xdc   : > { %2557 = vrot.lane.b32.xlu1 %v2561_v28, %s2885_s27  ;;  %v1028_v31 = vadd.f32 %v1027_v30, %v1013_v29  ;;  %v1040_v32 = vpop.f32.mrf.mxu1  ;;  %v3313_v30 = vand.u32 15, %v761_v16 }
  0xdd   : > { %v1041_v38 = vadd.f32 %v1040_v32, %v1013_v29  ;;  %v4010_v29 = vmov 0 }
  0xde   : > { %v3173_v33 = vmax.f32 %v1028_v31, 0.0  ;;  %v4011_v29 = vsel %vm3309_vm14, 4294967295, %v4010_v29 }
  0xdf   : > { %v3190_v39 = vmax.f32 %v1041_v38, 0.0  ;;  %v3329_v38 = vld [vmem:[%s4012_s1] sm:$0xf]  ;;  %s2891_s1 = smov 98  }
  0xe0   : > { %v2576_v34 = vpack.i.bf16 %v3173_v33, %v2882_v27  ;;  %v2596_v37 = vpack.i.bf16 %v3173_v33, %v3161_v23 }
  0xe1   : > { %v2606_v40 = vpack.i.bf16 %v3190_v39, %v3173_v33 }
  0xe3   : > { %2567 = vrot.lane.b32.xlu0 %v2561_v28, %s2886_s25  ;;  %2577 = vrot.lane.b32.xlu2 %v2576_v34, %s2880_s2  ;;  %v1029_v35 = vpop.f32.mrf.mxu0 }
  0xe4   : > { %884 = vrot.lane.b32.xlu1 %v3161_v23, %s3952_s21  ;;  %v1042_v36 = vpop.f32.mrf.mxu1  ;;  %v3322_v35 = vadd.s32 1, %v3313_v30 }
  0xe6   : > { %vm3962_vm0 = vcmp.lt.s32.totalorder %v3322_v35, 16 }
  0xeb   : > { %2592 = vrot.lane.b32.xlu0 %v2576_v34, %s2884_s22  ;;  %2587 = vrot.lane.b32.xlu2 %v2561_v28, %s3954_s5 }
  0xec   : > { %2572 = vrot.lane.b32.xlu1 %v2576_v34, %s2881_s19 }
  0xf3   : > { %936 = vrot.lane.b32.xlu0 %v3161_v23, %s3954_s5  ;;  %2597 = vrot.lane.b32.xlu2 %v2596_v37, %s2885_s27 }
  0xf4   : > { %2582 = vrot.lane.b32.xlu1 %v2576_v34, %s2879_s4 }
  0xfb   : > { %1080 = vrot.lane.b32.xlu0 %v3190_v39, %s2884_s22  ;;  %1100 = vrot.lane.b32.xlu2 %v3190_v39, %s2881_s19 }
  0xfc   : > { %854 = vrot.lane.b32.xlu1 %v3161_v23, %s2886_s25 }
 0x103   : > { %2607 = vrot.lane.b32.xlu0 %v2606_v40, %s2886_s25  ;;  %1118 = vrot.lane.b32.xlu2 %v3190_v39, %s2879_s4 }
 0x104   : > { %1090 = vrot.lane.b32.xlu1 %v3190_v39, %s2880_s2 }
 0x10b   : > { %1349 = vperm.xlu0 %2535, %v1346_v41   ;;  %2602 = vrot.lane.b32.xlu2 %v2606_v40, %s3952_s21  ;;  %s2893_s21 = smov 2  }
 0x10c   : > { %1060 = vrot.lane.b32.xlu1 %v3190_v39, %s2885_s27 }
 0x113   : > { %1286 = vrot.lane.b32.xlu0 %v2882_v27, %s2889_s30 }
 0x114   : > { %2612 = vrot.lane.b32.xlu1 %v2606_v40, %s3954_s5  ;;  %s2894_s5 = smov 30  }
 0x11c   : > { %1250 = vrot.lane.b32.xlu1 %v2882_v27, %s2891_s1 }
 0x12d   : > { %v3212_v42 = vpop.permute.xlu2 %2542 }
 0x12e   : > { %v2545_v57 = vunpack.i.h.bf16 %v3212_v42  ;;  %v2544_v58 = vunpack.i.l.bf16 %v3212_v42 }
 0x130   : > { %v913_v3 = vsel %vm3950_vm5, %v2544_v58, %v2545_v57 }
 0x135   : > { %v3214_v44 = vpop.permute.xlu2 %2552 }
 0x136   : > { %v2555_v60 = vunpack.i.h.bf16 %v3214_v44  ;;  %v2554_v61 = vunpack.i.l.bf16 %v3214_v44 }
 0x138   : > { %v900_v7 = vsel %vm3960_vm7, %v2554_v61, %v2555_v60 }
 0x139   : > { %v2240_v17 = vpack.c.bf16 %v900_v7, %v3159_v22 }
 0x13d   : > { %v3218_v47 = vpop.permute.xlu2 %2577 }
 0x13e   : > { %v3346_v61 = vunpack.i.l.bf16 %v3218_v47 }
 0x145   : > { %v3223_v49 = vpop.permute.xlu0 %2547  ;;  %v3241_v62 = vpop.permute.xlu2 %2587 }
 0x146   : > { %v3225_v50 = vpop.permute.xlu1 %2537  ;;  %v2550_v53 = vunpack.i.h.bf16 %v3223_v49  ;;  %v2549_v54 = vunpack.i.l.bf16 %v3223_v49  ;;  %v2590_v26 = vunpack.i.h.bf16 %v3241_v62  ;;  %v3303_v28 = vunpack.i.l.bf16 %v3241_v62 }
 0x147   : > { %v2540_v51 = vunpack.i.h.bf16 %v3225_v50  ;;  %v2539_v52 = vunpack.i.l.bf16 %v3225_v50 }
 0x148   : > { %v950_v1 = vsel %vm3961_vm4, %v2549_v54, %v2550_v53  ;;  %v939_v34 = vsel %vm3957_vm15, %v3303_v28, %v2590_v26 }
 0x149   : > { %v926_v55 = vsel %vm3963_vm1, %v2539_v52, %v2540_v51  ;;  %v2237_v6 = vpack.c.bf16 %v950_v1, %v913_v3  ;;  %v914_v3 = vsel %vm3950_vm5, %v2545_v57, %v3346_v61 }
 0x14a   : > { %v930_v56 = vsel %vm3946_vm2, %v926_v55, 0.0 }
 0x14b   : > { %v962_v59 = vpack.c.bf16 %v930_v56, %v930_v56 }
 0x14d   : > { %v3244_v63 = vpop.permute.xlu0 %2562  ;;  %v977_v0 = vsel %vm3947_vm3, %v962_v59, 0  ;;  %v3293_v21 = vpop.permute.xlu2 %2597 }
 0x14e   : > { %v3250_v2 = vpop.permute.xlu1 %2557  ;;  %985 = vmatpush.bf16.msra.mxu2 %v977_v0  ;;  %v2565_v9 = vunpack.i.h.bf16 %v3244_v63  ;;  %v3267_v10 = vunpack.i.l.bf16 %v3244_v63  ;;  %v2599_v49 = vunpack.i.l.bf16 %v3293_v21 }
 0x14f   : > { %v2560_v12 = vunpack.i.h.bf16 %v3250_v2  ;;  %v3271_v14 = vunpack.i.l.bf16 %v3250_v2 }
 0x150   : > { %v887_v20 = vsel %vm3958_vm11, %v3267_v10, %v2565_v9 }
 0x151   : > { %v874_v19 = vsel %vm3959_vm10, %v3271_v14, %v2560_v12 }
 0x152   : > { %2238 = vmatpush.bf16.msk.msra.mxu2 %vm3258_vm9, %v2237_v6  ;;  %v2243_v31 = vpack.c.bf16 %v887_v20, %v874_v19  ;;  %v875_v20 = vsel %vm3959_vm10, %v2560_v12, %v2599_v49  ;;  %v2580_v12 = vunpack.i.h.bf16 %v3218_v47 }
 0x155   : > { %v3283_v18 = vpop.permute.xlu0 %2567  ;;  %v1101_v43 = vpop.permute.xlu2 %1100 }
 0x156   : > { %v2570_v24 = vunpack.i.h.bf16 %v3283_v18  ;;  %v3297_v25 = vunpack.i.l.bf16 %v3283_v18  ;;  %v885_v22 = vpop.permute.xlu1 %884  ;;  %2241 = vmatpush.bf16.msk.msra.mxu2 %vm3278_vm12, %v2240_v17 }
 0x158   : > { %v857_v32 = vsel %vm3956_vm13, %v3297_v25, %v2570_v24 }
 0x159   : > { %v2246_v36 = vpack.c.bf16 %v939_v34, %v857_v32 }
 0x15a   : > { %2244 = vmatpush.bf16.msk.msra.mxu2 %vm3309_vm14, %v2243_v31 }
 0x15d   : > { %v2593_v54 = vpop.permute.xlu0 %2592  ;;  %v1119_v17 = vpop.permute.xlu2 %1118 }
 0x15e   : > { %v2573_v37 = vpop.permute.xlu1 %2572  ;;  %2247 = vmatpush.bf16.msk.msra.mxu2 %vm3258_vm9, %v2246_v36  ;;  %v3351_v0 = vunpack.i.l.bf16 %v2593_v54 }
 0x15f   : > { %v2575_v40 = vunpack.i.h.bf16 %v2573_v37  ;;  %v3331_v41 = vunpack.i.l.bf16 %v2573_v37 }
 0x160   : > { %v901_v42 = vsel %vm3960_vm7, %v2555_v60, %v3351_v0  ;;  %v888_v60 = vsel %vm3958_vm11, %v2565_v9, %v885_v22 }
 0x161   : > { %v927_v45 = vsel %vm3963_vm1, %v2540_v51, %v3331_v41  ;;  %v1102_v52 = vsel %vm3963_vm1, %v2575_v40, %v1101_v43  ;;  %2248 = vmatmul.msk.bf16.vlgmr.msra.gmra.mxu2 %vm3945_vm6, %v3329_v38  ;;  %vm838_vm6 = vcmp.ge.s32.totalorder %v3313_v30, 1  ;;  %v2253_v19 = vpack.c.bf16 %v901_v42, %v3161_v23 }
 0x162   : > { %v931_v55 = vsel %vm3962_vm0, %v927_v45, 0.0  ;;  %v1106_v56 = vsel %vm3946_vm2, %v1102_v52, 0.0  ;;  %vm3366_vm2 = vmpackc.low %vm3948_vm8, %vm838_vm6  ;;  %v1103_v44 = vsel %vm3963_vm1, %v1101_v43, %v3331_v41  ;;  %v4017_v23 = vmov 0 }
 0x163   : > { %v963_v58 = vpack.c.bf16 %v931_v55, %v931_v55  ;;  %v1132_v59 = vpack.c.bf16 %v1106_v56, %v1106_v56  ;;  %v1107_v63 = vsel %vm3962_vm0, %v1103_v44, 0.0  ;;  %v2256_v31 = vpack.c.bf16 %v888_v60, %v875_v20 }
 0x164   : > { %v1133_v2 = vpack.c.bf16 %v1107_v63, %v1107_v63  ;;  %v2595_v43 = vunpack.i.h.bf16 %v2593_v54  ;;  %vm4031_vm1 = vmmov 1  }
 0x165   : > { %v980_v50 = vsel %vm3947_vm3, %v963_v58, 0  ;;  %v1145_v51 = vsel %vm3947_vm3, %v1132_v59, 0  ;;  %v937_v57 = vpop.permute.xlu0 %936  ;;  %vm3380_vm3 = vmpackc.low %vm3962_vm0, %vm3948_vm8  ;;  %v2603_v34 = vpop.permute.xlu2 %2602  ;;  %v2600_v58 = vunpack.i.h.bf16 %v3293_v21 }
 0x166   : > { %v2583_v62 = vpop.permute.xlu1 %2582  ;;  %998 = vmatpush.bf16.msra.mxu3 %v980_v50  ;;  %1153 = vmatpush.bf16.msrb.mxu2 %v1145_v51  ;;  %vm3399_vm8 = vmpackc.low %vm838_vm6, %vm3962_vm0  ;;  %v940_v32 = vsel %vm3957_vm15, %v2590_v26, %v937_v57  ;;  %vm4019_vm6 = vcmask 1043456   ;;  %v2604_v56 = vunpack.i.l.bf16 %v2603_v34  ;;  %vm1239_vm0 = vcmask 1031168  }
 0x167   : > { %v3353_v1 = vunpack.i.l.bf16 %v2583_v62  ;;  %v4018_v23 = vsel %vm3399_vm8, 4294967295, %v4017_v23  ;;  %v2585_v9 = vunpack.i.h.bf16 %v2583_v62  ;;  %v1148_v47 = vsel %vm4019_vm6, %v1133_v2, 0 }
 0x168   : > { %v1072_v62 = vsel %vm3958_vm11, %v3267_v10, %v2604_v56 }
 0x169   : > { %v951_v6 = vsel %vm3961_vm4, %v2550_v53, %v3353_v1  ;;  %v1120_v52 = vsel %vm3961_vm4, %v2585_v9, %v1119_v17  ;;  %v1121_v54 = vsel %vm3961_vm4, %v1119_v17, %v3353_v1 }
 0x16a   : > { %v2250_v16 = vpack.c.bf16 %v951_v6, %v914_v3  ;;  %v2605_v3 = vunpack.i.h.bf16 %v2603_v34 }
 0x16c   : > { %2251 = vmatpush.bf16.msk.msra.mxu3 %vm3366_vm2, %v2250_v16 }
 0x16d   : > { %v1081_v36 = vpop.permute.xlu0 %1080 }
 0x16e   : > { %v855_v18 = vpop.permute.xlu1 %854  ;;  %v1082_v26 = vsel %vm3960_vm7, %v2595_v43, %v1081_v36  ;;  %v1083_v50 = vsel %vm3960_vm7, %v1081_v36, %v3351_v0  ;;  %vm3965_vm7 = vcmp.ge.s32.totalorder %v3313_v30, 2 }
 0x16f   : > { %v858_v22 = vsel %vm3956_vm13, %v2570_v24, %v855_v18  ;;  %v2268_v51 = vpack.c.bf16 %v1082_v26, %v3173_v33  ;;  %v2281_v21 = vpack.c.bf16 %v1083_v50, %v3190_v39  ;;  %v1135_v33 = vld [vmem:[%s4021_s29] sm:$0xff]  ;;  %v1073_v39 = vsel %vm3958_vm11, %v2604_v56, %v2605_v3  ;;  %s4022_s29 = sld [smem:[#allocation22_spill]] }
 0x170   : > { %2254 = vmatpush.bf16.msk.msra.mxu3 %vm3380_vm3, %v2253_v19  ;;  %v2259_v37 = vpack.c.bf16 %v940_v32, %v858_v22  ;;  %1138 = vperm.xlu2 %2616, %v1135_v33   ;;  %v1345_v32 = vld [vmem:[%s4024_s11] sm:$0xf]  ;;  %vm1178_vm11 = vcmp.ge.s32.totalorder %v3216_v46, 2 }
 0x174   : > { %2257 = vmatpush.bf16.msk.msra.mxu3 %vm3399_vm8, %v2256_v31 }
 0x175   : > { %v2608_v42 = vpop.permute.xlu0 %2607 }
 0x176   : > { %v1091_v40 = vpop.permute.xlu1 %1090  ;;  %v2610_v49 = vunpack.i.h.bf16 %v2608_v42  ;;  %v2609_v18 = vunpack.i.l.bf16 %v2608_v42 }
 0x177   : > { %v1092_v45 = vsel %vm3950_vm5, %v2580_v12, %v1091_v40  ;;  %v1093_v24 = vsel %vm3950_vm5, %v1091_v40, %v3346_v61  ;;  %vm4020_vm5 = vcmask 588800   ;;  %v1134_v12 = vld [vmem:[%s4022_s29] sm:$0xf]  ;;  %s2903_s29 = smov 51  }
 0x178   : > { %v2265_v55 = vpack.c.bf16 %v1120_v52, %v1092_v45  ;;  %2260 = vmatpush.bf16.msk.msra.mxu3 %vm3366_vm2, %v2259_v37  ;;  %v2278_v59 = vpack.c.bf16 %v1121_v54, %v1093_v24  ;;  %1263 = vrot.lane.b32.xlu2 %v2882_v27, %s2890_s3  ;;  %v1052_v20 = vsel %vm3956_vm13, %v3297_v25, %v2609_v18  ;;  %vm4023_vm6 = vmmov %vm4020_vm5 }
 0x179   : > { %v1053_v31 = vsel %vm3956_vm13, %v2609_v18, %v2610_v49  ;;  %vm4025_vm13 = vcmask 261120  }
 0x17a   : > { %2266 = vmatpush.bf16.msk.msrb.mxu2 %vm3258_vm9, %v2265_v55 }
 0x17b   : > { %2261 = vmatmul.msk.bf16.vlgmr.msra.gmra.mxu3 %vm4020_vm5, %v3329_v38  ;;  %v1062_v38 = vsel %vm3959_vm10, %v3271_v14, %v2600_v58 }
 0x17c   : > { %1166 = vmatpush.bf16.msrb.mxu3 %v1148_v47  ;;  %v2271_v17 = vpack.c.bf16 %v1072_v62, %v1062_v38 }
 0x17e   : > { %v1061_v6 = vpop.permute.xlu1 %1060  ;;  %2269 = vmatpush.bf16.msk.msrb.mxu2 %vm3278_vm12, %v2268_v51 }
 0x17f   : > { %v1063_v16 = vsel %vm3959_vm10, %v2600_v58, %v1061_v6  ;;  %v1350_v6 = vpop.permute.xlu0 %1349  ;;  %vm1288_vm10 = vcmask 785408  }
 0x180   : > { %2279 = vmatpush.bf16.msk.msrb.mxu3 %vm3366_vm2, %v2278_v59  ;;  %v2284_v57 = vpack.c.bf16 %v1073_v39, %v1063_v16  ;;  %1237 = vrot.lane.b32.xlu2 %v2882_v27, %s2892_s8 }
 0x182   : > { %2272 = vmatpush.bf16.msk.msrb.mxu2 %vm3309_vm14, %v2271_v17 }
 0x184   : > { %2282 = vmatpush.bf16.msk.msrb.mxu3 %vm3380_vm3, %v2281_v21 }
 0x186   : > { %v2613_v19 = vpop.permute.xlu1 %2612 }
 0x187   : > { %v2615_v44 = vunpack.i.h.bf16 %v2613_v19  ;;  %v2614_v60 = vunpack.i.l.bf16 %v2613_v19  ;;  %v1287_v49 = vpop.permute.xlu0 %1286  ;;  %v1180_v19 = vadd.s32 2, %v3216_v46 }
 0x188   : > { %2285 = vmatpush.bf16.msk.msrb.mxu3 %vm3399_vm8, %v2284_v57 }
 0x189   : > { %v1112_v63 = vsel %vm3957_vm15, %v3303_v28, %v2614_v60  ;;  %v1113_v9 = vsel %vm3957_vm15, %v2614_v60, %v2615_v44  ;;  %vm4026_vm15 = vmmov %vm4025_vm13  ;;  %v3518_v44 = vadd.s32 2, %v3313_v30 }
 0x18a   : > { %v2274_v22 = vpack.c.bf16 %v1112_v63, %v1052_v20  ;;  %v2287_v2 = vpack.c.bf16 %v1113_v9, %v1053_v31 }
 0x18c   : > { %2275 = vmatpush.bf16.msk.msrb.mxu2 %vm3258_vm9, %v2274_v22  ;;  %2288 = vmatpush.bf16.msk.msrb.mxu3 %vm3366_vm2, %v2287_v2 }
 0x18e   : > { %v1251_v57 = vpop.permute.xlu1 %1250 }
 0x18f   : > { %2276 = vmatmul.msk.bf16.vlgmr.msrb.gmra.mxu2 %vm4020_vm5, %v1134_v12  ;;  %2289 = vmatmul.msk.bf16.vlgmr.msrb.gmra.mxu3 %vm4023_vm6, %v1134_v12  ;;  %vm3964_vm5 = vcmp.lt.s32.totalorder %v3518_v44, 16  ;;  %vm1252_vm6 = vcmask 801792  }
 0x190   : > { %1361 = vmatpush.bf16.msra.mxu2 %v3127_v4  ;;  %1374 = vmatpush.bf16.msra.mxu3 %v3129_v8 }
 0x194   : > { %1362 = vmatpush.bf16.msra.mxu2 %v3132_v11  ;;  %1375 = vmatpush.bf16.msra.mxu3 %v3138_v13 }
 0x19f   : > { %2316 = vmatmul.msk.bf16.vlgmr.msra.gmra.mxu2 %vm4025_vm13, %v1345_v32  ;;  %2317 = vmatmul.msk.bf16.vlgmr.msra.gmra.mxu3 %vm4026_vm15, %v1345_v32  ;;  %vm1265_vm13 = vcmask 769024   ;;  %vm1182_vm15 = vcmp.lt.s32.totalorder %v1180_v19, 16 }
 0x1a0   : > { %vm2296_vm8 = vmpackc.low %vm1178_vm11, %vm1182_vm15 }
 0x1ca   : > { %v1139_v43 = vpop.permute.xlu2 %1138 }
 0x1d2   : > { %v1264_v42 = vpop.permute.xlu2 %1263 }
 0x1da   : > { %v1238_v39 = vpop.permute.xlu2 %1237 }
 0x1e4   : > { %v3479_v34 = vpop.f32.mrf.mxu2 }
 0x1ec   : > { %v993_v36 = vpop.f32.mrf.mxu2 }
 0x1fe   : > { %v3481_v37 = vpop.f32.mrf.mxu3 }
 0x206   : > { %v1006_v40 = vpop.f32.mrf.mxu3 }
 0x212   : > { %v1159_v45 = vpop.f32.mrf.mxu2  ;;  %v1172_v52 = vpop.f32.mrf.mxu3 }
 0x213   : > { %v1160_v24 = vadd.f32 %v1159_v45, %v1139_v43  ;;  %v1173_v55 = vadd.f32 %v1172_v52, %v1139_v43 }
 0x215   : > { %v3483_v47 = vmax.f32 %v1160_v24, 0.0  ;;  %v3485_v56 = vmax.f32 %v1173_v55, 0.0 }
 0x217   : > { %v2627_v26 = vpack.i.bf16 %v3485_v56, %v3483_v47  ;;  %v2642_v59 = vpack.i.bf16 %v3483_v47, %v2882_v27 }
 0x219   : > { %2628 = vrot.lane.b32.xlu2 %v2627_v26, %s2889_s30  ;;  %2623 = vrot.lane.b32.xlu0 %v2627_v26, %s2891_s1  ;;  %s2896_s30 = smov 32   ;;  %s4116_s1 = sld [smem:[#allocation30_spill]] }
 0x21a   : > { %2618 = vrot.lane.b32.xlu1 %v2627_v26, %s2890_s3  ;;  %v1161_v54 = vpop.f32.mrf.mxu2  ;;  %v1174_v58 = vpop.f32.mrf.mxu3  ;;  %s4028_s3 = smov 1  }
 0x221   : > { %2643 = vrot.lane.b32.xlu2 %v2642_v59, %s2893_s21  ;;  %2638 = vrot.lane.b32.xlu0 %v2642_v59, %s2894_s5 }
 0x222   : > { %2633 = vrot.lane.b32.xlu1 %v2627_v26, %s2892_s8  ;;  %v1364_v50 = vpop.f32.mrf.mxu2  ;;  %v1377_v51 = vpop.f32.mrf.mxu3  ;;  %s4027_s8 = smov 16  }
 0x223   : > { %v3496_v21 = vadd.f32 %v1364_v50, %v1350_v6  ;;  %v3498_v38 = vadd.f32 %v1377_v51, %v1350_v6 }
 0x225   : > { %v1381_v33 = vmax.f32 %v3496_v21, 0.0  ;;  %v1382_v16 = vmax.f32 %v3498_v38, 0.0 }
 0x227   : > { %v2672_v17 = vpack.i.bf16 %v1382_v16, %v1381_v33 }
 0x229   : > { %2648 = vrot.lane.b32.xlu2 %v2642_v59, %s2895_s0  ;;  %1224 = vrot.lane.b32.xlu0 %v3485_v56, %s2893_s21 }
 0x22a   : > { %1211 = vrot.lane.b32.xlu1 %v3485_v56, %s2894_s5  ;;  %v1366_v62 = vpop.f32.mrf.mxu2  ;;  %v1379_v3 = vpop.f32.mrf.mxu3  ;;  %s4105_s5 = sld [smem:[#allocation29_spill]] }
 0x231   : > { %1276 = vrot.lane.b32.xlu2 %v3485_v56, %s2896_s30  ;;  %1194 = vrot.lane.b32.xlu0 %v3485_v56, %s2895_s0  ;;  %s2904_s0 = smov 48  }
 0x232   : > { %2653 = vrot.lane.b32.xlu1 %v2642_v59, %s2896_s30  ;;  %s2828_s30 = scalar_lea.hbm %s4116_s1, 128 }
 0x239   : > { %2673 = vrot.lane.b32.xlu2 %v2672_v17, %s2884_s22  ;;  %2663 = vrot.lane.b32.xlu0 %v2672_v17, %s2880_s2 }
 0x23a   : > { %2658 = vrot.lane.b32.xlu1 %v2672_v17, %s2881_s19 }
 0x241   : > { %2688 = vrot.lane.b32.xlu2 %v2672_v17, %s2886_s25  ;;  %2678 = vrot.lane.b32.xlu0 %v2672_v17, %s2885_s27 }
 0x242   : > { %2668 = vrot.lane.b32.xlu1 %v2672_v17, %s2879_s4 }
 0x249   : > { %2693 = vrot.lane.b32.xlu0 %v2672_v17, %s4027_s8 }
 0x24a   : > { %2683 = vrot.lane.b32.xlu1 %v2672_v17, %s4028_s3 }
 0x273   : > { %v2629_v18 = vpop.permute.xlu2 %2628 }
 0x274   : > { %v2631_v32 = vunpack.i.h.bf16 %v2629_v18  ;;  %v2630_v43 = vunpack.i.l.bf16 %v2629_v18 }
 0x276   : > { %v1289_v62 = vsel %vm1288_vm10, %v2630_v43, %v2631_v32  ;;  %v1290_v3 = vsel %vm1288_vm10, %v2631_v32, %v1287_v49  ;;  %vm2293_vm10 = vmpackc.low %vm1182_vm15, %vm4031_vm1 }
 0x27b   : > { %v2644_v24 = vpop.permute.xlu2 %2643 }
 0x27c   : > { %v2646_v49 = vunpack.i.h.bf16 %v2644_v24 }
 0x283   : > { %v2649_v32 = vpop.permute.xlu2 %2648 }
 0x28b   : > { %v2624_v60 = vpop.permute.xlu0 %2623 }
 0x28c   : > { %v2619_v20 = vpop.permute.xlu1 %2618  ;;  %v2626_v9 = vunpack.i.h.bf16 %v2624_v60  ;;  %v2625_v22 = vunpack.i.l.bf16 %v2624_v60 }
 0x28d   : > { %v2621_v63 = vunpack.i.h.bf16 %v2619_v20  ;;  %v2620_v31 = vunpack.i.l.bf16 %v2619_v20 }
 0x28e   : > { %v1254_v55 = vsel %vm1252_vm6, %v2626_v9, %v1251_v57  ;;  %v1253_v26 = vsel %vm1252_vm6, %v2625_v22, %v2626_v9  ;;  %vm3538_vm6 = vmpackc.low %vm4031_vm1, %vm3965_vm7  ;;  %v2645_v9 = vunpack.i.l.bf16 %v2644_v24  ;;  %v2650_v24 = vunpack.i.l.bf16 %v2649_v32 }
 0x28f   : > { %v1267_v2 = vsel %vm1265_vm13, %v2621_v63, %v1264_v42  ;;  %v1266_v12 = vsel %vm1265_vm13, %v2620_v31, %v2621_v63  ;;  %vm4029_vm13 = vcmask 1043456   ;;  %v2304_v57 = vpack.c.bf16 %v1290_v3, %v1254_v55 }
 0x290   : > { %v1270_v36 = vsel %vm1182_vm15, %v1266_v12, 0.0  ;;  %v1271_v40 = vsel %vm3964_vm5, %v1267_v2, 0.0  ;;  %vm4030_vm4 = vmmov %vm4029_vm13  ;;  %v2291_v18 = vpack.c.bf16 %v1289_v62, %v1253_v26 }
 0x291   : > { %v1301_v45 = vpack.c.bf16 %v1270_v36, %v1270_v36  ;;  %v1302_v52 = vpack.c.bf16 %v1271_v40, %v1271_v40  ;;  %vm3531_vm5 = vmpackc.low %vm4031_vm1, %vm1178_vm11  ;;  %vm4038_vm11 = vcmask 261120  }
 0x292   : > { %vm4039_vm15 = vmmov %vm4038_vm11 }
 0x293   : > { %v2639_v54 = vpop.permute.xlu0 %2638  ;;  %v1314_v58 = vsel %vm4029_vm13, %v1301_v45, 0  ;;  %v1317_v59 = vsel %vm4030_vm4, %v1302_v52, 0  ;;  %vm1213_vm4 = vcmask 244736   ;;  %vm4036_vm13 = vcmp.lt.s32.totalorder %v3518_v44, 16 }
 0x294   : > { %v2634_v50 = vpop.permute.xlu1 %2633  ;;  %1322 = vmatpush.bf16.msra.mxu0 %v1314_v58  ;;  %1335 = vmatpush.bf16.msra.mxu1 %v1317_v59  ;;  %v2641_v60 = vunpack.i.h.bf16 %v2639_v54  ;;  %v2640_v20 = vunpack.i.l.bf16 %v2639_v54  ;;  %vm2306_vm7 = vmpackc.low %vm4036_vm13, %vm4031_vm1  ;;  %vm4037_vm1 = vcmp.ge.s32.totalorder %v3313_v30, 2  ;;  %v2651_v52 = vunpack.i.h.bf16 %v2649_v32  ;;  %v1277_v58 = vpop.permute.xlu2 %1276 }
 0x295   : > { %v2636_v6 = vunpack.i.h.bf16 %v2634_v50  ;;  %v2635_v17 = vunpack.i.l.bf16 %v2634_v50  ;;  %vm2309_vm14 = vmpackc.low %vm4037_vm1, %vm4036_vm13  ;;  %vm4041_vm1 = vcmask 588800   ;;  %vm4049_vm13 = vcmask 924672  }
 0x296   : > { %v1214_v12 = vsel %vm1213_vm4, %v2640_v20, %v2641_v60 }
 0x297   : > { %v1241_v63 = vsel %vm1239_vm0, %v2636_v6, %v1238_v39  ;;  %v1240_v31 = vsel %vm1239_vm0, %v2635_v17, %v2636_v6  ;;  %vm1226_vm0 = vcmask 15360   ;;  %v1472_v17 = vld [vmem:[%s3920_s14] sm:$0xff] }
 0x298   : > { %2292 = vmatpush.bf16.msk.msra.mxu0 %vm3531_vm5, %v2291_v18  ;;  %2305 = vmatpush.bf16.msk.msra.mxu1 %vm3538_vm6, %v2304_v57  ;;  %v2307_v22 = vpack.c.bf16 %v1241_v63, %v3485_v56  ;;  %v2294_v39 = vpack.c.bf16 %v1240_v31, %v3483_v47  ;;  %v1227_v43 = vsel %vm1226_vm0, %v2645_v9, %v2646_v49  ;;  %v1303_v57 = vld [vmem:[%s4040_s9] sm:$0xf] }
 0x299   : > { %v2297_v47 = vpack.c.bf16 %v1227_v43, %v1214_v12  ;;  %1475 = vperm.xlu1 %2697, %v1472_v17  }
 0x29b   : > { %v1225_v2 = vpop.permute.xlu0 %1224 }
 0x29c   : > { %v1228_v36 = vsel %vm1226_vm0, %v2646_v49, %v1225_v2  ;;  %v1212_v40 = vpop.permute.xlu1 %1211  ;;  %2295 = vmatpush.bf16.msk.msra.mxu0 %vm2293_vm10, %v2294_v39  ;;  %2308 = vmatpush.bf16.msk.msra.mxu1 %vm2306_vm7, %v2307_v22  ;;  %vm1196_vm7 = vcmask 277504   ;;  %v2674_v9 = vpop.permute.xlu2 %2673  ;;  %vm4047_vm10 = vcmask 1043456  }
 0x29d   : > { %v1215_v45 = vsel %vm1213_vm4, %v2641_v60, %v1212_v40  ;;  %v1197_v59 = vsel %vm1196_vm7, %v2650_v24, %v2651_v52  ;;  %vm4046_vm4 = vcmp.lt.s32.totalorder %v3322_v35, 16  ;;  %vm4048_vm0 = vmmov %vm4047_vm10 }
 0x29e   : > { %v2310_v56 = vpack.c.bf16 %v1228_v36, %v1215_v45  ;;  %v2676_v45 = vunpack.i.h.bf16 %v2674_v9 }
 0x2a0   : > { %2298 = vmatpush.bf16.msk.msra.mxu0 %vm2296_vm8, %v2297_v47  ;;  %2311 = vmatpush.bf16.msk.msra.mxu1 %vm2309_vm14, %v2310_v56  ;;  %vm4042_vm8 = vmmov %vm4041_vm1  ;;  %vm4043_vm14 = vcmask 908288   ;;  %v2675_v47 = vunpack.i.l.bf16 %v2674_v9 }
 0x2a3   : > { %v1195_v55 = vpop.permute.xlu0 %1194 }
 0x2a4   : > { %v2654_v19 = vpop.permute.xlu1 %2653  ;;  %v1198_v50 = vsel %vm1196_vm7, %v2651_v52, %v1195_v55  ;;  %vm4050_vm7 = vmmov %vm4049_vm13 }
 0x2a5   : > { %v2656_v26 = vunpack.i.h.bf16 %v2654_v19  ;;  %v2655_v54 = vunpack.i.l.bf16 %v2654_v19 }
 0x2a7   : > { %v1279_v62 = vsel %vm4038_vm11, %v2656_v26, %v1277_v58  ;;  %v1278_v44 = vsel %vm4039_vm15, %v2655_v54, %v2656_v26  ;;  %vm4051_vm11 = vcmask 916480  }
 0x2a8   : > { %v2313_v3 = vpack.c.bf16 %v1279_v62, %v1198_v50  ;;  %v2300_v6 = vpack.c.bf16 %v1278_v44, %v1197_v59  ;;  %vm4052_vm15 = vmmov %vm4051_vm11  ;;  %v2689_v62 = vpop.permute.xlu2 %2688 }
 0x2aa   : > { %2301 = vmatpush.bf16.msk.msra.mxu0 %vm3531_vm5, %v2300_v6  ;;  %2314 = vmatpush.bf16.msk.msra.mxu1 %vm3538_vm6, %v2313_v3  ;;  %vm4044_vm5 = vmmov %vm4043_vm14  ;;  %vm4045_vm6 = vcmp.lt.s32.totalorder %v3221_v48, 16 }
 0x2ab   : > { %v2664_v18 = vpop.permute.xlu0 %2663 }
 0x2ac   : > { %v2659_v60 = vpop.permute.xlu1 %2658  ;;  %v2666_v2 = vunpack.i.h.bf16 %v2664_v18  ;;  %v2665_v12 = vunpack.i.l.bf16 %v2664_v18 }
 0x2ad   : > { %v2661_v20 = vunpack.i.h.bf16 %v2659_v60  ;;  %v2660_v63 = vunpack.i.l.bf16 %v2659_v60  ;;  %2302 = vmatmul.msk.bf16.vlgmr.msra.gmra.mxu0 %vm4041_vm1, %v1303_v57  ;;  %2315 = vmatmul.msk.bf16.vlgmr.msra.gmra.mxu1 %vm4042_vm8, %v1303_v57  ;;  %vm4053_vm1 = vcmask 1039360  }
 0x2ae   : > { %v1430_v24 = vsel %vm4049_vm13, %v2666_v2, %v3346_v61  ;;  %v1429_v55 = vsel %vm4050_vm7, %v2665_v12, %v2666_v2  ;;  %v1420_v59 = vsel %vm4053_vm1, %v2676_v45, %v3351_v0  ;;  %vm4054_vm8 = vmmov %vm4053_vm1  ;;  %vm4061_vm13 = vnez %v4011_v29 }
 0x2af   : > { %v1440_v51 = vsel %vm4043_vm14, %v2661_v20, %v3331_v41  ;;  %v1439_v31 = vsel %vm4044_vm5, %v2660_v63, %v2661_v20  ;;  %v1419_v50 = vsel %vm4054_vm8, %v2675_v47, %v2676_v45  ;;  %v2335_v17 = vpack.c.bf16 %v1420_v59, %v1382_v16 }
 0x2b0   : > { %v1443_v42 = vsel %vm4045_vm6, %v1439_v31, 0.0  ;;  %v1444_v49 = vsel %vm4046_vm4, %v1440_v51, 0.0  ;;  %v2322_v57 = vpack.c.bf16 %v1419_v50, %v1381_v33  ;;  %v2691_v31 = vunpack.i.h.bf16 %v2689_v62 }
 0x2b1   : > { %v1469_v22 = vpack.c.bf16 %v1443_v42, %v1443_v42  ;;  %v1470_v39 = vpack.c.bf16 %v1444_v49, %v1444_v49  ;;  %v2690_v42 = vunpack.i.l.bf16 %v2689_v62  ;;  %vm4055_vm14 = vcmask 121856  }
 0x2b2   : > { %vm4056_vm5 = vmmov %vm4055_vm14  ;;  %vm4057_vm6 = vcmask 7168   ;;  %vm4062_vm7 = vnez %v4018_v23  ;;  %vm4065_vm1 = vcmask 588800   ;;  %v1603_v23 = vld [vmem:[%s3921_s15] sm:$0xf] }
 0x2b3   : > { %v2679_v32 = vpop.permute.xlu0 %2678  ;;  %v1482_v36 = vsel %vm4047_vm10, %v1469_v22, 0  ;;  %v1485_v40 = vsel %vm4048_vm0, %v1470_v39, 0  ;;  %vm4058_vm4 = vmmov %vm4057_vm6  ;;  %vm4059_vm10 = vcmask 130048  }
 0x2b4   : > { %v2669_v43 = vpop.permute.xlu1 %2668  ;;  %1490 = vmatpush.bf16.msrb.mxu0 %v1482_v36  ;;  %1503 = vmatpush.bf16.msrb.mxu1 %v1485_v40  ;;  %v2681_v44 = vunpack.i.h.bf16 %v2679_v32  ;;  %v2680_v3 = vunpack.i.l.bf16 %v2679_v32  ;;  %vm4060_vm0 = vmmov %vm4059_vm10  ;;  %v1471_v40 = vld [vmem:[%s3919_s13] sm:$0xf] }
 0x2b5   : > { %v2671_v56 = vunpack.i.h.bf16 %v2669_v43  ;;  %v2670_v52 = vunpack.i.l.bf16 %v2669_v43  ;;  %vm4066_vm8 = vmmov %vm4065_vm1 }
 0x2b6   : > { %v1399_v38 = vsel %vm4055_vm14, %v3271_v14, %v2680_v3  ;;  %v1400_v16 = vsel %vm4056_vm5, %v2680_v3, %v2681_v44  ;;  %v1604_v44 = vld [vmem:[%s3922_s16] sm:$0xff]  ;;  %vm4067_vm14 = vcmask 908288  }
 0x2b7   : > { %v1458_v19 = vsel %vm4051_vm11, %v2671_v56, %v3353_v1  ;;  %v1457_v26 = vsel %vm4052_vm15, %v2670_v52, %v2671_v56  ;;  %vm4063_vm11 = vcmask 138240   ;;  %vm4068_vm5 = vmmov %vm4067_vm14 }
 0x2b8   : > { %v2332_v54 = vpack.c.bf16 %v1458_v19, %v1430_v24  ;;  %v2319_v58 = vpack.c.bf16 %v1457_v26, %v1429_v55  ;;  %v1389_v2 = vsel %vm4063_vm11, %v3297_v25, %v2690_v42  ;;  %vm4064_vm15 = vmmov %vm4063_vm11  ;;  %vm4073_vm11 = vcmask 916480  }
 0x2b9   : > { %v1390_v12 = vsel %vm4064_vm15, %v2690_v42, %v2691_v31  ;;  %vm4074_vm15 = vmmov %vm4073_vm11 }
 0x2ba   : > { %2320 = vmatpush.bf16.msk.msrb.mxu0 %vm3258_vm9, %v2319_v58  ;;  %2333 = vmatpush.bf16.msk.msrb.mxu1 %vm3366_vm2, %v2332_v54 }
 0x2bb   : > { %v2694_v6 = vpop.permute.xlu0 %2693 }
 0x2bc   : > { %v2684_v18 = vpop.permute.xlu1 %2683  ;;  %v2696_v60 = vunpack.i.h.bf16 %v2694_v6  ;;  %v2695_v20 = vunpack.i.l.bf16 %v2694_v6 }
 0x2bd   : > { %v2686_v63 = vunpack.i.h.bf16 %v2684_v18  ;;  %v2685_v51 = vunpack.i.l.bf16 %v2684_v18 }
 0x2be   : > { %2323 = vmatpush.bf16.msk.msrb.mxu0 %vm3278_vm12, %v2322_v57  ;;  %2336 = vmatpush.bf16.msk.msrb.mxu1 %vm3380_vm3, %v2335_v17  ;;  %v1449_v22 = vsel %vm4059_vm10, %v3303_v28, %v2695_v20  ;;  %v1450_v39 = vsel %vm4060_vm0, %v2695_v20, %v2696_v60  ;;  %vm4071_vm10 = vcmask 1043456  }
 0x2bf   : > { %v1409_v21 = vsel %vm4057_vm6, %v3267_v10, %v2685_v51  ;;  %v1410_v33 = vsel %vm4058_vm4, %v2685_v51, %v2686_v63  ;;  %v2328_v32 = vpack.c.bf16 %v1449_v22, %v1389_v2  ;;  %v2341_v36 = vpack.c.bf16 %v1450_v39, %v1390_v12  ;;  %vm4072_vm0 = vmmov %vm4071_vm10 }
 0x2c0   : > { %v2325_v49 = vpack.c.bf16 %v1409_v21, %v1399_v38  ;;  %v2338_v9 = vpack.c.bf16 %v1410_v33, %v1400_v16  ;;  %vm4069_vm6 = vcmp.lt.s32.totalorder %v3221_v48, 16  ;;  %vm4070_vm4 = vcmp.lt.s32.totalorder %v3322_v35, 16 }
 0x2c2   : > { %2326 = vmatpush.bf16.msk.msrb.mxu0 %vm4061_vm13, %v2325_v49  ;;  %2339 = vmatpush.bf16.msk.msrb.mxu1 %vm4062_vm7, %v2338_v9 }
 0x2c6   : > { %2329 = vmatpush.bf16.msk.msrb.mxu0 %vm3258_vm9, %v2328_v32  ;;  %2342 = vmatpush.bf16.msk.msrb.mxu1 %vm3366_vm2, %v2341_v36 }
 0x2c9   : > { %2330 = vmatmul.msk.bf16.vlgmr.msrb.gmra.mxu0 %vm4065_vm1, %v1471_v40  ;;  %2343 = vmatmul.msk.bf16.vlgmr.msrb.gmra.mxu1 %vm4066_vm8, %v1471_v40  ;;  %vm4075_vm1 = vcmask 924672  }
 0x2ca   : > { %vm4076_vm8 = vmmov %vm4075_vm1 }
 0x30b   : > { %v1476_v52 = vpop.permute.xlu1 %1475 }
 0x32a   : > { %v3631_v43 = vpop.f32.mrf.mxu0  ;;  %v3633_v45 = vpop.f32.mrf.mxu1 }
 0x332   : > { %v1330_v47 = vpop.f32.mrf.mxu0  ;;  %v1343_v56 = vpop.f32.mrf.mxu1 }
 0x346   : > { %v1496_v24 = vpop.f32.mrf.mxu0  ;;  %v1509_v55 = vpop.f32.mrf.mxu1 }
 0x347   : > { %v1497_v19 = vadd.f32 %v1496_v24, %v1476_v52  ;;  %v1510_v26 = vadd.f32 %v1509_v55, %v1476_v52 }
 0x349   : > { %v1513_v54 = vmax.f32 %v1497_v19, 0.0  ;;  %v1514_v58 = vmax.f32 %v1510_v26, 0.0 }
 0x34b   : > { %v2708_v59 = vpack.i.bf16 %v1514_v58, %v1513_v54 }
 0x34d   : > { %2709 = vrot.lane.b32.xlu1 %v2708_v59, %s2879_s4  ;;  %2704 = vrot.lane.b32.xlu0 %v2708_v59, %s2880_s2  ;;  %s2897_s4 = smov 77   ;;  %s2898_s2 = smov 80  }
 0x34e   : > { %2699 = vrot.lane.b32.xlu2 %v2708_v59, %s2881_s19  ;;  %v1498_v50 = vpop.f32.mrf.mxu0  ;;  %v1511_v62 = vpop.f32.mrf.mxu1  ;;  %s2899_s19 = smov 83  }
 0x355   : > { %2724 = vrot.lane.b32.xlu1 %v2708_v59, %s4028_s3  ;;  %2719 = vrot.lane.b32.xlu0 %v2708_v59, %s2885_s27  ;;  %s2901_s3 = smov 3  }
 0x356   : > { %2714 = vrot.lane.b32.xlu2 %v2708_v59, %s2884_s22  ;;  %s2900_s22 = smov 125  }
 0x35d   : > { %1607 = vperm.xlu1 %2697, %v1604_v44   ;;  %2734 = vrot.lane.b32.xlu0 %v2708_v59, %s4027_s8 }
 0x35e   : > { %2729 = vrot.lane.b32.xlu2 %v2708_v59, %s2886_s25 }
 0x365   : > { %1732 = vrot.lane.b32.xlu0 %v2882_v27, %s2897_s4  ;;  %1756 = vrot.lane.b32.xlu1 %v2882_v27, %s2898_s2 }
 0x366   : > { %1719 = vrot.lane.b32.xlu2 %v2882_v27, %s2899_s19 }
 0x36d   : > { %1706 = vrot.lane.b32.xlu0 %v2882_v27, %s2900_s22 }
 0x3a8   : > { %v2700_v3 = vpop.permute.xlu2 %2699 }
 0x3a9   : > { %v2702_v6 = vunpack.i.h.bf16 %v2700_v3  ;;  %v2701_v17 = vunpack.i.l.bf16 %v2700_v3 }
 0x3ab   : > { %v1572_v57 = vsel %vm4067_vm14, %v2702_v6, %v3331_v41  ;;  %v1571_v18 = vsel %vm4068_vm5, %v2701_v17, %v2702_v6  ;;  %vm4077_vm14 = vcmask 1039360  }
 0x3ac   : > { %v1575_v60 = vsel %vm4069_vm6, %v1571_v18, 0.0  ;;  %v1576_v20 = vsel %vm4070_vm4, %v1572_v57, 0.0  ;;  %vm4078_vm5 = vmmov %vm4077_vm14  ;;  %vm4079_vm6 = vcmask 7168  }
 0x3ad   : > { %v1601_v63 = vpack.c.bf16 %v1575_v60, %v1575_v60  ;;  %v1602_v51 = vpack.c.bf16 %v1576_v20, %v1576_v20  ;;  %vm4080_vm4 = vmmov %vm4079_vm6 }
 0x3af   : > { %v1614_v31 = vsel %vm4071_vm10, %v1601_v63, 0  ;;  %v1617_v42 = vsel %vm4072_vm0, %v1602_v51, 0  ;;  %vm4081_vm10 = vcmask 121856  }
 0x3b0   : > { %1622 = vmatpush.bf16.msrb.mxu2 %v1614_v31  ;;  %1635 = vmatpush.bf16.msrb.mxu3 %v1617_v42  ;;  %v2715_v38 = vpop.permute.xlu2 %2714  ;;  %vm4082_vm0 = vmmov %vm4081_vm10 }
 0x3b1   : > { %v2717_v16 = vunpack.i.h.bf16 %v2715_v38  ;;  %v2716_v21 = vunpack.i.l.bf16 %v2715_v38 }
 0x3b3   : > { %v1552_v40 = vsel %vm4077_vm14, %v2717_v16, %v3351_v0  ;;  %v1551_v47 = vsel %vm4078_vm5, %v2716_v21, %v2717_v16  ;;  %v1304_v21 = vld [vmem:[%s4089_s10] sm:$0xff]  ;;  %vm1758_vm5 = vcmask 654336  }
 0x3b4   : > { %v2348_v56 = vpack.c.bf16 %v1551_v47, %v1513_v54 }
 0x3b8   : > { %v2730_v50 = vpop.permute.xlu2 %2729 }
 0x3b9   : > { %v2732_v15 = vunpack.i.h.bf16 %v2730_v50  ;;  %v2731_v53 = vunpack.i.l.bf16 %v2730_v50 }
 0x3bf   : > { %v2710_v41 = vpop.permute.xlu1 %2709  ;;  %v2705_v33 = vpop.permute.xlu0 %2704 }
 0x3c0   : > { %v2712_v49 = vunpack.i.h.bf16 %v2710_v41  ;;  %v2711_v9 = vunpack.i.l.bf16 %v2710_v41  ;;  %v2707_v48 = vunpack.i.h.bf16 %v2705_v33  ;;  %v2706_v22 = vunpack.i.l.bf16 %v2705_v33  ;;  %v2091_v33 = vld [vmem:[%s3929_s23 + $0x18] sm:$0xff] }
 0x3c2   : > { %v1590_v35 = vsel %vm4073_vm11, %v2712_v49, %v3353_v1  ;;  %v1589_v39 = vsel %vm4074_vm15, %v2711_v9, %v2712_v49  ;;  %v1562_v2 = vsel %vm4075_vm1, %v2707_v48, %v3346_v61  ;;  %v1561_v12 = vsel %vm4076_vm8, %v2706_v22, %v2707_v48  ;;  %v2089_v49 = vld [vmem:[%s3929_s23 + $0x8] sm:$0xff]  ;;  %v1774_v9 = vld [vmem:[%s3924_s18] sm:$0xff]  ;;  %v2090_v48 = vld [vmem:[%s3929_s23 + $0x10] sm:$0xff]  ;;  %v1720_v22 = vpop.permute.xlu2 %1719 }
 0x3c3   : > { %v2358_v32 = vpack.c.bf16 %v1590_v35, %v1562_v2  ;;  %v2345_v36 = vpack.c.bf16 %v1589_v39, %v1561_v12  ;;  %v2361_v1 = vpack.c.bf16 %v1552_v40, %v1514_v58  ;;  %vm4085_vm11 = vcmask 130048  }
 0x3c4   : > { %vm4086_vm15 = vmmov %vm4085_vm11  ;;  %v3743_v35 = vadd.s32 3, %v3313_v30  ;;  %v3746_v39 = vadd.s32 3, %v3216_v46  ;;  %vm4091_vm8 = vcmask 1043456  }
 0x3c5   : > { %2346 = vmatpush.bf16.msk.msrb.mxu2 %vm3258_vm9, %v2345_v36  ;;  %2359 = vmatpush.bf16.msk.msrb.mxu3 %vm3366_vm2, %v2358_v32  ;;  %vm4092_vm14 = vmmov %vm4091_vm8 }
 0x3c6   : > { %vm1651_vm1 = vcmp.lt.s32.totalorder %v3746_v39, 16 }
 0x3c7   : > { %v2725_v52 = vpop.permute.xlu1 %2724  ;;  %v2720_v24 = vpop.permute.xlu0 %2719 }
 0x3c8   : > { %v2727_v61 = vunpack.i.h.bf16 %v2725_v52  ;;  %v2726_v55 = vunpack.i.l.bf16 %v2725_v52  ;;  %v2722_v19 = vunpack.i.h.bf16 %v2720_v24  ;;  %v2721_v26 = vunpack.i.l.bf16 %v2720_v24 }
 0x3c9   : > { %2349 = vmatpush.bf16.msk.msrb.mxu2 %vm3278_vm12, %v2348_v56  ;;  %2362 = vmatpush.bf16.msk.msrb.mxu3 %vm3380_vm3, %v2361_v1  ;;  %vm4083_vm3 = vcmask 138240  }
 0x3ca   : > { %v1541_v0 = vsel %vm4079_vm6, %v3267_v10, %v2726_v55  ;;  %v1542_v59 = vsel %vm4080_vm4, %v2726_v55, %v2727_v61  ;;  %v1531_v54 = vsel %vm4081_vm10, %v3271_v14, %v2721_v26  ;;  %v1532_v58 = vsel %vm4082_vm0, %v2721_v26, %v2722_v19  ;;  %vm4084_vm12 = vmmov %vm4083_vm3 }
 0x3cb   : > { %v2351_v62 = vpack.c.bf16 %v1541_v0, %v1531_v54  ;;  %v2364_v44 = vpack.c.bf16 %v1542_v59, %v1532_v58  ;;  %v1521_v17 = vsel %vm4083_vm3, %v3297_v25, %v2731_v53  ;;  %v1522_v14 = vsel %vm4084_vm12, %v2731_v53, %v2732_v15 }
 0x3cc   : > { %vm1647_vm6 = vcmp.ge.s32.totalorder %v3216_v46, 3  ;;  %vm1721_vm4 = vcmask 678912   ;;  %vm1648_vm10 = vcmp.ge.s32.totalorder %v3313_v30, 3  ;;  %vm1708_vm0 = vcmask 1022976  }
 0x3cd   : > { %2352 = vmatpush.bf16.msk.msrb.mxu2 %vm4061_vm13, %v2351_v62  ;;  %2365 = vmatpush.bf16.msk.msrb.mxu3 %vm4062_vm7, %v2364_v44  ;;  %vm4087_vm13 = vcmask 588800   ;;  %vm4093_vm3 = vmmov 1  }
 0x3ce   : > { %vm4088_vm7 = vmmov %vm4087_vm13 }
 0x3cf   : > { %v2735_v3 = vpop.permute.xlu0 %2734  ;;  %v1608_v25 = vpop.permute.xlu1 %1607  ;;  %vm3761_vm12 = vmpackc.low %vm4093_vm3, %vm1647_vm6 }
 0x3d0   : > { %v2737_v10 = vunpack.i.h.bf16 %v2735_v3  ;;  %v2736_v6 = vunpack.i.l.bf16 %v2735_v3 }
 0x3d2   : > { %v1581_v57 = vsel %vm4085_vm11, %v3303_v28, %v2736_v6  ;;  %v1582_v18 = vsel %vm4086_vm15, %v2736_v6, %v2737_v10  ;;  %vm3768_vm11 = vmpackc.low %vm4093_vm3, %vm1648_vm10 }
 0x3d3   : > { %v2354_v29 = vpack.c.bf16 %v1581_v57, %v1521_v17  ;;  %v2367_v60 = vpack.c.bf16 %v1582_v18, %v1522_v14  ;;  %vm2373_vm15 = vmpackc.low %vm1651_vm1, %vm4093_vm3 }
 0x3d5   : > { %2355 = vmatpush.bf16.msk.msrb.mxu2 %vm3258_vm9, %v2354_v29  ;;  %2368 = vmatpush.bf16.msk.msrb.mxu3 %vm3366_vm2, %v2367_v60  ;;  %vm1734_vm2 = vcmask 629760   ;;  %vm1652_vm9 = vcmp.lt.s32.totalorder %v3743_v35, 16 }
 0x3d7   : > { %v1733_v12 = vpop.permute.xlu0 %1732  ;;  %v1757_v19 = vpop.permute.xlu1 %1756 }
 0x3d8   : > { %2356 = vmatmul.msk.bf16.vlgmr.msrb.gmra.mxu2 %vm4087_vm13, %v1603_v23  ;;  %2369 = vmatmul.msk.bf16.vlgmr.msrb.gmra.mxu3 %vm4088_vm7, %v1603_v23  ;;  %vm2386_vm13 = vmpackc.low %vm1652_vm9, %vm4093_vm3  ;;  %vm1695_vm7 = vcmask 23552  }
 0x3df   : > { %v1707_v26 = vpop.permute.xlu0 %1706 }
 0x45b   : > { %v1628_v28 = vpop.f32.mrf.mxu2  ;;  %v1641_v20 = vpop.f32.mrf.mxu3 }
 0x45c   : > { %v1629_v63 = vadd.f32 %v1628_v28, %v1608_v25  ;;  %v1642_v51 = vadd.f32 %v1641_v20, %v1608_v25 }
 0x45e   : > { %v3705_v31 = vmax.f32 %v1629_v63, 0.0  ;;  %v3707_v5 = vmax.f32 %v1642_v51, 0.0 }
 0x460   : > { %v2748_v7 = vpack.i.bf16 %v3707_v5, %v3705_v31  ;;  %v2763_v16 = vpack.i.bf16 %v3705_v31, %v2882_v27  ;;  %v2088_v27 = vld [vmem:[%s3929_s23] sm:$0xff] }
 0x462   : > { %2749 = vrot.lane.b32.xlu0 %v2748_v7, %s2898_s2  ;;  %2744 = vrot.lane.b32.xlu1 %v2748_v7, %s2899_s19  ;;  %s4090_s19 = sld [smem:[#allocation19_spill]] }
 0x463   : > { %2739 = vrot.lane.b32.xlu2 %v2748_v7, %s2897_s4  ;;  %v1630_v42 = vpop.f32.mrf.mxu2  ;;  %v1643_v38 = vpop.f32.mrf.mxu3 }
 0x468   : > { %v965_v41 = vld [vmem:[%s4090_s19] sm:$0xff]  ;;  %s4113_s19 = sld [smem:[#allocation28_spill]] }
 0x46a   : > { %2764 = vrot.lane.b32.xlu0 %v2763_v16, %s2901_s3  ;;  %2759 = vrot.lane.b32.xlu1 %v2763_v16, %s2902_s6 }
 0x46b   : > { %2754 = vrot.lane.b32.xlu2 %v2748_v7, %s2900_s22  ;;  %s4104_s22 = sld [smem:[#allocation27_spill]] }
 0x472   : > { %1663 = vrot.lane.b32.xlu0 %v3707_v5, %s2903_s29  ;;  %1693 = vrot.lane.b32.xlu1 %v3707_v5, %s2901_s3  ;;  %s4114_s3 = sshll.u32 %s3117_s7, 6 }
 0x473   : > { %1680 = vrot.lane.b32.xlu2 %v3707_v5, %s2902_s6  ;;  %s3861_s6 = scalar_lea.vmem [#allocation5], %s4114_s3  ;;  %s2137_s3 = scalar_lea.sflag [#allocation4], %s3117_s7 }
 0x474   : > { %s2149_s27 = sshll.u32 %s3861_s6, 4  ;;  %s2150_s27 = int_to_ptr.vmem [resolvable:$true] %s2149_s27 }
 0x47a   : > { %1307 = vperm.xlu0 %2535, %v1304_v21   ;;  %2774 = vrot.lane.b32.xlu1 %v2763_v16, %s2904_s0 }
 0x47b   : > { %2769 = vrot.lane.b32.xlu2 %v2763_v16, %s2903_s29  ;;  %s4115_s29 = sld [smem:[#allocation10_spill]] }
 0x481   : > { %s2458_s21 = sshll.u32 %s4115_s29, 6 }
 0x482   : > { %2094 = vperm.xlu0 %2535, %v2088_v27   ;;  %968 = vperm.xlu1 %2697, %v965_v41   ;;  %s2148_s4 = scalar_lea.hbm %s4116_s1, %s2458_s21 }
 0x483   : > { %1745 = vrot.lane.b32.xlu2 %v3707_v5, %s2904_s0  ;;  %s4106_s0 = smov %s4105_s5  ;;  %s2151_s25 = sshll.u32 %s2148_s4, 4  ;;  %s2152_s25 = int_to_ptr.hbm [resolvable:$true] %s2151_s25 }
 0x484   : > { %s2822_s29 = sshra.s32 %s2152_s25, 4  ;;  %s2823_s29 = int_to_ptr.hbm [resolvable:$true] %s2822_s29 }
 0x485   : > { %p2829_p0 = scmp.lt.s32.totalorder %s2823_s29, %s4116_s1 }
 0x48a   : > { %2109 = vperm.xlu0 %2535, %v2091_v33   ;;  %2099 = vperm.xlu1 %2697, %v2089_v49  }
 0x48b   : > { %1777 = vperm.xlu2 %2616, %v1774_v9  }
 0x493   : > { %2104 = vperm.xlu2 %2616, %v2090_v48  }
 0x4bd   : > { %v2740_v2 = vpop.permute.xlu2 %2739 }
 0x4be   : > { %v2742_v32 = vunpack.i.h.bf16 %v2740_v2  ;;  %v2741_v36 = vunpack.i.l.bf16 %v2740_v2 }
 0x4c0   : > { %v1735_v40 = vsel %vm1734_vm2, %v2741_v36, %v2742_v32  ;;  %v1736_v47 = vsel %vm1734_vm2, %v2742_v32, %v1733_v12  ;;  %vm1682_vm2 = vcmask 367616  }
 0x4c1   : > { %v1740_v1 = vsel %vm1652_vm9, %v1736_v47, 0.0  ;;  %v1739_v56 = vsel %vm1651_vm1, %v1735_v40, 0.0 }
 0x4c2   : > { %v1772_v52 = vpack.c.bf16 %v1740_v1, %v1740_v1  ;;  %v1771_v24 = vpack.c.bf16 %v1739_v56, %v1739_v56 }
 0x4c4   : > { %v1784_v61 = vsel %vm4091_vm8, %v1771_v24, 0  ;;  %v1787_v55 = vsel %vm4092_vm14, %v1772_v52, 0  ;;  %vm2376_vm8 = vmpackc.low %vm1647_vm6, %vm1651_vm1  ;;  %vm1747_vm1 = vcmask 392192  }
 0x4c5   : > { %1792 = vmatpush.bf16.msra.mxu0 %v1784_v61  ;;  %1805 = vmatpush.bf16.msra.mxu1 %v1787_v55  ;;  %v2755_v0 = vpop.permute.xlu2 %2754  ;;  %vm2389_vm14 = vmpackc.low %vm1648_vm10, %vm1652_vm9  ;;  %vm4098_vm9 = vcmask 1043456   ;;  %vm4100_vm10 = vcmask 588800  }
 0x4c6   : > { %v2757_v59 = vunpack.i.h.bf16 %v2755_v0  ;;  %v2756_v54 = vunpack.i.l.bf16 %v2755_v0  ;;  %vm4099_vm6 = vmmov %vm4098_vm9 }
 0x4c7   : > { %vm4102_vm3 = vmmov %vm4099_vm6 }
 0x4c8   : > { %v1709_v60 = vsel %vm1708_vm0, %v2756_v54, %v2757_v59  ;;  %v1710_v23 = vsel %vm1708_vm0, %v2757_v59, %v1707_v26  ;;  %vm4101_vm0 = vmmov %vm4100_vm10 }
 0x4c9   : > { %v2374_v28 = vpack.c.bf16 %v1709_v60, %v3705_v31  ;;  %v2387_v20 = vpack.c.bf16 %v1710_v23, %v3707_v5  ;;  %v2455_v23 = vld [vmem:[%s4113_s19 + $0x8] sm:$0xff] }
 0x4cd   : > { %v1681_v25 = vpop.permute.xlu2 %1680 }
 0x4d4   : > { %v2750_v58 = vpop.permute.xlu0 %2749  ;;  %v2745_v50 = vpop.permute.xlu1 %2744 }
 0x4d5   : > { %v2752_v62 = vunpack.i.h.bf16 %v2750_v58  ;;  %v2751_v44 = vunpack.i.l.bf16 %v2750_v58  ;;  %v2747_v15 = vunpack.i.h.bf16 %v2745_v50  ;;  %v2746_v53 = vunpack.i.l.bf16 %v2745_v50  ;;  %v2770_v5 = vpop.permute.xlu2 %2769 }
 0x4d6   : > { %v2771_v39 = vunpack.i.l.bf16 %v2770_v5 }
 0x4d7   : > { %v1760_v10 = vsel %vm1758_vm5, %v2752_v62, %v1757_v19  ;;  %v1759_v6 = vsel %vm1758_vm5, %v2751_v44, %v2752_v62  ;;  %v1723_v17 = vsel %vm1721_vm4, %v2747_v15, %v1720_v22  ;;  %v1722_v14 = vsel %vm1721_vm4, %v2746_v53, %v2747_v15 }
 0x4d8   : > { %v2384_v18 = vpack.c.bf16 %v1760_v10, %v1723_v17  ;;  %v2371_v29 = vpack.c.bf16 %v1759_v6, %v1722_v14  ;;  %v2772_v22 = vunpack.i.h.bf16 %v2770_v5  ;;  %vm1665_vm5 = vcmask 416768  }
 0x4d9   : > { %vm1837_vm4 = vcmask 64512  }
 0x4da   : > { %2372 = vmatpush.bf16.msk.msra.mxu0 %vm3761_vm12, %v2371_v29  ;;  %2385 = vmatpush.bf16.msk.msra.mxu1 %vm3768_vm11, %v2384_v18  ;;  %v1666_v1 = vsel %vm1665_vm5, %v2771_v39, %v2772_v22  ;;  %v2454_v18 = vld [vmem:[%s4113_s19] sm:$0xff] }
 0x4dc   : > { %v2765_v63 = vpop.permute.xlu0 %2764  ;;  %v2760_v51 = vpop.permute.xlu1 %2759 }
 0x4dd   : > { %v2767_v7 = vunpack.i.h.bf16 %v2765_v63  ;;  %v2766_v42 = vunpack.i.l.bf16 %v2765_v63  ;;  %v2762_v38 = vunpack.i.h.bf16 %v2760_v51  ;;  %v2761_v16 = vunpack.i.l.bf16 %v2760_v51  ;;  %v1746_v47 = vpop.permute.xlu2 %1745 }
 0x4de   : > { %2375 = vmatpush.bf16.msk.msra.mxu0 %vm2373_vm15, %v2374_v28  ;;  %2388 = vmatpush.bf16.msk.msra.mxu1 %vm2386_vm13, %v2387_v20 }
 0x4df   : > { %v1696_v21 = vsel %vm1695_vm7, %v2766_v42, %v2767_v7  ;;  %v1683_v27 = vsel %vm1682_vm2, %v2761_v16, %v2762_v38  ;;  %v1684_v49 = vsel %vm1682_vm2, %v2762_v38, %v1681_v25  ;;  %vm4111_vm2 = vmmov %vm4102_vm3 }
 0x4e0   : > { %v2377_v31 = vpack.c.bf16 %v1696_v21, %v1683_v27 }
 0x4e2   : > { %2378 = vmatpush.bf16.msk.msra.mxu0 %vm2376_vm8, %v2377_v31  ;;  %vm4112_vm8 = vmmov %vm4111_vm2 }
 0x4e4   : > { %v1664_v41 = vpop.permute.xlu0 %1663  ;;  %v1694_v33 = vpop.permute.xlu1 %1693 }
 0x4e5   : > { %v1697_v9 = vsel %vm1695_vm7, %v2767_v7, %v1694_v33  ;;  %v1667_v35 = vsel %vm1665_vm5, %v2772_v22, %v1664_v41 }
 0x4e6   : > { %v2390_v48 = vpack.c.bf16 %v1697_v9, %v1684_v49 }
 0x4e8   : > { %2391 = vmatpush.bf16.msk.msra.mxu1 %vm2389_vm14, %v2390_v48 }
 0x4ec   : > { %v1308_v46 = vpop.permute.xlu0 %1307  ;;  %v2775_v2 = vpop.permute.xlu1 %2774 }
 0x4ed   : > { %v1329_v12 = vadd.f32 %v3631_v43, %v1308_v46  ;;  %v1342_v32 = vadd.f32 %v3633_v45, %v1308_v46  ;;  %v2777_v36 = vunpack.i.h.bf16 %v2775_v2  ;;  %v2776_v40 = vunpack.i.l.bf16 %v2775_v2  ;;  %v1773_v43 = vld [vmem:[%s3923_s17] sm:$0xf] }
 0x4ee   : > { %v2452_v45 = vld [vmem:[%s3926_s20] sm:$0xff] }
 0x4ef   : > { %v1825_v56 = vpack.c.bf16 %v1329_v12, %v1329_v12  ;;  %v1826_v30 = vpack.c.bf16 %v1342_v32, %v1342_v32  ;;  %v1748_v52 = vsel %vm1747_vm1, %v2776_v40, %v2777_v36  ;;  %v1749_v24 = vsel %vm1747_vm1, %v2777_v36, %v1746_v47 }
 0x4f0   : > { %v2380_v61 = vpack.c.bf16 %v1748_v52, %v1666_v1  ;;  %v2393_v55 = vpack.c.bf16 %v1749_v24, %v1667_v35 }
 0x4f1   : > { %v1845_v19 = vsel %vm4098_vm9, %v1825_v56, 0  ;;  %v1848_v26 = vsel %vm4099_vm6, %v1826_v30, 0 }
 0x4f2   : > { %2381 = vmatpush.bf16.msk.msra.mxu0 %vm3761_vm12, %v2380_v61  ;;  %2394 = vmatpush.bf16.msk.msra.mxu1 %vm3768_vm11, %v2393_v55  ;;  %vm4103_vm12 = vmmov %vm4102_vm3  ;;  %vm4107_vm11 = vcmask 261120  }
 0x4f3   : > { %1857 = vmatpush.bf16.msra.mxu2 %v1845_v19  ;;  %1876 = vmatpush.bf16.msra.mxu3 %v1848_v26  ;;  %vm4108_vm15 = vmmov %vm4107_vm11 }
 0x4f4   : > { %v969_v0 = vpop.permute.xlu1 %968  ;;  %vm4109_vm13 = vmmov %vm4107_vm11  ;;  %v2095_v47 = vpop.permute.xlu0 %2094 }
 0x4f5   : > { %v992_v59 = vadd.f32 %v3479_v34, %v969_v0  ;;  %v1005_v54 = vadd.f32 %v3481_v37, %v969_v0  ;;  %2382 = vmatmul.msk.bf16.vlgmr.msra.gmra.mxu0 %vm4100_vm10, %v1773_v43  ;;  %2395 = vmatmul.msk.bf16.vlgmr.msra.gmra.mxu1 %vm4101_vm0, %v1773_v43  ;;  %v2450_v34 = vld [vmem:[%s4104_s22] sm:$0xff]  ;;  %v2453_v37 = vld [vmem:[%s3926_s20 + $0x8] sm:$0xff]  ;;  %vm4110_vm7 = vmmov %vm4107_vm11 }
 0x4f6   : > { %2404 = vmatmul.msk.bf16.vlgmr.msra.gmra.mxu2 %vm1837_vm4, %v2452_v45  ;;  %2406 = vmatmul.msk.bf16.vlgmr.msra.gmra.mxu3 %vm1837_vm4, %v2452_v45 }
 0x4f7   : > { %v1819_v58 = vpack.c.bf16 %v992_v59, %v992_v59  ;;  %v1820_v50 = vpack.c.bf16 %v1005_v54, %v1005_v54 }
 0x4f9   : > { %v1905_v62 = vsel %vm4102_vm3, %v1819_v58, 0  ;;  %v1908_v44 = vsel %vm4103_vm12, %v1820_v50, 0 }
 0x4fa   : > { %1917 = vmatpush.bf16.msrb.mxu0 %v1905_v62  ;;  %1936 = vmatpush.bf16.msrb.mxu1 %v1908_v44 }
 0x4fc   : > { %v2100_v54 = vpop.permute.xlu1 %2099 }
 0x4fe   : > { %2048 = vmatpush.bf16.msra.mxu0 %v3127_v4  ;;  %2067 = vmatpush.bf16.msra.mxu1 %v3129_v8  ;;  %v2451_v4 = vld [vmem:[%s4104_s22 + $0x8] sm:$0xff]  ;;  %v2456_v8 = vld [vmem:[%s4105_s5] sm:$0xff] }
 0x502   : > { %2049 = vmatpush.bf16.msra.mxu0 %v3132_v11  ;;  %2068 = vmatpush.bf16.msra.mxu1 %v3138_v13  ;;  %v2457_v11 = vld [vmem:[%s4106_s0 + $0x8] sm:$0xff]  ;;  %v1778_v13 = vpop.permute.xlu2 %1777  ;;  %s2824_s0 = scalar_lea.hbm %s2823_s29, 64 }
 0x503   : > { %p2825_p6 = scmp.ne.s32.totalorder %s2823_s29, %s2824_s0  ;;  %p2830_p1 = scmp.lt.s32.totalorder %s2828_s30, %s2824_s0 }
 0x505   : > { %2416 = vmatmul.msk.bf16.vlgmr.msrb.gmra.mxu0 %vm1837_vm4, %v2450_v34  ;;  %2418 = vmatmul.msk.bf16.vlgmr.msrb.gmra.mxu1 %vm1837_vm4, %v2450_v34  ;;  %p2826_p9 = pnand %p2825_p6, %p3081_p11  ;;  %p2831_p3 = por %p2830_p1, %p2829_p0 }
 0x506   : > { %2405 = vmatmul.msk.bf16.gmra.mxu2 %vm1837_vm4, %v2453_v37  ;;  %2407 = vmatmul.msk.bf16.gmra.mxu3 %vm1837_vm4, %v2453_v37 }
 0x507   : > { %p2827_p13 = pneg %p2826_p9 }
 0x509   : > { %p2832_p4 = pnand %p2831_p3, %p2827_p13 }
 0x515   : > { %2417 = vmatmul.msk.bf16.gmra.mxu0 %vm1837_vm4, %v2451_v4  ;;  %2419 = vmatmul.msk.bf16.gmra.mxu1 %vm1837_vm4, %v2451_v4 }
 0x525   : > { %2440 = vmatmul.msk.bf16.vlgmr.msra.gmra.mxu0 %vm4107_vm11, %v2456_v8  ;;  %2442 = vmatmul.msk.bf16.vlgmr.msra.gmra.mxu1 %vm4108_vm15, %v2456_v8 }
 0x535   : > { %2441 = vmatmul.msk.bf16.gmra.mxu0 %vm4109_vm13, %v2457_v11  ;;  %2443 = vmatmul.msk.bf16.gmra.mxu1 %vm4110_vm7, %v2457_v11 }
 0x572   : > { %v1798_v15 = vpop.f32.mrf.mxu0  ;;  %v1811_v53 = vpop.f32.mrf.mxu1 }
 0x573   : > { %v1799_v3 = vadd.f32 %v1798_v15, %v1778_v13  ;;  %v1812_v10 = vadd.f32 %v1811_v53, %v1778_v13 }
 0x575   : > { %v1952_v6 = vpack.c.bf16 %v1799_v3, %v1799_v3  ;;  %v1953_v17 = vpack.c.bf16 %v1812_v10, %v1812_v10 }
 0x577   : > { %v1971_v14 = vsel %vm4111_vm2, %v1952_v6, 0  ;;  %v1974_v57 = vsel %vm4112_vm8, %v1953_v17, 0  ;;  %v2105_v6 = vpop.permute.xlu2 %2104 }
 0x578   : > { %1983 = vmatpush.bf16.msrb.mxu2 %v1971_v14  ;;  %2002 = vmatpush.bf16.msrb.mxu3 %v1974_v57 }
 0x579   : > { %v1859_v20 = vpop.f32.mrf.mxu2  ;;  %v1878_v63 = vpop.f32.mrf.mxu3 }
 0x57a   : > { %v1800_v29 = vpop.f32.mrf.mxu0  ;;  %v1813_v60 = vpop.f32.mrf.mxu1 }
 0x57b   : > { %2428 = vmatmul.msk.bf16.vlgmr.msrb.gmra.mxu2 %vm1837_vm4, %v2454_v18  ;;  %2430 = vmatmul.msk.bf16.vlgmr.msrb.gmra.mxu3 %vm1837_vm4, %v2454_v18 }
 0x581   : > { %v1861_v42 = vpop.f32.mrf.mxu2  ;;  %v1880_v38 = vpop.f32.mrf.mxu3 }
 0x582   : > { %v1919_v25 = vpop.f32.mrf.mxu0  ;;  %v1938_v28 = vpop.f32.mrf.mxu1 }
 0x583   : > { %v1920_v22 = vadd.f32 %v1919_v25, %v1859_v20  ;;  %v1939_v39 = vadd.f32 %v1938_v28, %v1878_v63 }
 0x589   : > { %v1864_v27 = vpop.f32.mrf.mxu2  ;;  %v1883_v31 = vpop.f32.mrf.mxu3 }
 0x58a   : > { %v1921_v51 = vpop.f32.mrf.mxu0  ;;  %v1940_v7 = vpop.f32.mrf.mxu1 }
 0x58b   : > { %2429 = vmatmul.msk.bf16.gmra.mxu2 %vm1837_vm4, %v2455_v23  ;;  %2431 = vmatmul.msk.bf16.gmra.mxu3 %vm1837_vm4, %v2455_v23  ;;  %v1922_v52 = vadd.f32 %v1921_v51, %v1861_v42  ;;  %v1941_v24 = vadd.f32 %v1940_v7, %v1880_v38  ;;  %v2110_v38 = vpop.permute.xlu0 %2109 }
 0x591   : > { %v1866_v33 = vpop.f32.mrf.mxu2  ;;  %v1885_v49 = vpop.f32.mrf.mxu3 }
 0x592   : > { %v1924_v16 = vpop.f32.mrf.mxu0  ;;  %v1943_v21 = vpop.f32.mrf.mxu1 }
 0x593   : > { %v1925_v62 = vadd.f32 %v1924_v16, %v1864_v27  ;;  %v1944_v44 = vadd.f32 %v1943_v21, %v1883_v31 }
 0x59a   : > { %v1926_v5 = vpop.f32.mrf.mxu0  ;;  %v1945_v41 = vpop.f32.mrf.mxu1 }
 0x59b   : > { %v1927_v57 = vadd.f32 %v1926_v5, %v1866_v33  ;;  %v1946_v18 = vadd.f32 %v1945_v41, %v1885_v49 }
 0x5a2   : > { %v2051_v9 = vpop.f32.mrf.mxu0  ;;  %v2070_v48 = vpop.f32.mrf.mxu1 }
 0x5aa   : > { %v2053_v56 = vpop.f32.mrf.mxu0  ;;  %v2072_v30 = vpop.f32.mrf.mxu1 }
 0x5b2   : > { %v2056_v4 = vpop.f32.mrf.mxu0  ;;  %v2075_v8 = vpop.f32.mrf.mxu1 }
 0x5ba   : > { %v2058_v63 = vpop.f32.mrf.mxu0  ;;  %v2077_v51 = vpop.f32.mrf.mxu1 }
 0x5fe   : > { %v1985_v46 = vpop.f32.mrf.mxu2  ;;  %v2004_v2 = vpop.f32.mrf.mxu3 }
 0x5ff   : > { %v2014_v12 = vadd.f32 %v1985_v46, %v1920_v22  ;;  %v2015_v32 = vadd.f32 %v2004_v2, %v1939_v39 }
 0x601   : > { %v2080_v36 = vadd.f32 %v2051_v9, %v2014_v12  ;;  %v2081_v40 = vadd.f32 %v2070_v48, %v2015_v32 }
 0x603   : > { %v2112_v1 = vadd.f32 %v2095_v47, %v2080_v36  ;;  %v2113_v35 = vadd.f32 %v2095_v47, %v2081_v40 }
 0x605   : > { %v2120_v61 = vmax.f32 %v2112_v1, 0.0  ;;  %v2121_v55 = vmax.f32 %v2113_v35, 0.0 }
 0x606   : > { %v1987_v19 = vpop.f32.mrf.mxu2  ;;  %v2006_v26 = vpop.f32.mrf.mxu3 }
 0x607   : > { %2128 = vst [vmem:[%s3861_s6] sm:$0xff] %v2120_v61  ;;  %v2016_v43 = vadd.f32 %v1987_v19, %v1922_v52  ;;  %v2017_v45 = vadd.f32 %v2006_v26, %v1941_v24 }
 0x608   : > { %2129 = vst [vmem:[%s3861_s6 + $0x8] sm:$0xff] %v2121_v55 }
 0x609   : > { %v2082_v0 = vadd.f32 %v2053_v56, %v2016_v43  ;;  %v2083_v59 = vadd.f32 %v2072_v30, %v2017_v45 }
 0x60b   : > { %v2114_v58 = vadd.f32 %v2100_v54, %v2082_v0  ;;  %v2115_v50 = vadd.f32 %v2100_v54, %v2083_v59 }
 0x60d   : > { %v2122_v34 = vmax.f32 %v2114_v58, 0.0  ;;  %v2123_v37 = vmax.f32 %v2115_v50, 0.0 }
 0x60e   : > { %v1990_v11 = vpop.f32.mrf.mxu2  ;;  %v2009_v13 = vpop.f32.mrf.mxu3 }
 0x60f   : > { %2130 = vst [vmem:[%s3861_s6 + $0x10] sm:$0xff] %v2122_v34  ;;  %v2018_v15 = vadd.f32 %v1990_v11, %v1925_v62  ;;  %v2019_v53 = vadd.f32 %v2009_v13, %v1944_v44 }
 0x610   : > { %2131 = vst [vmem:[%s3861_s6 + $0x18] sm:$0xff] %v2123_v37 }
 0x611   : > { %v2084_v3 = vadd.f32 %v2056_v4, %v2018_v15  ;;  %v2085_v10 = vadd.f32 %v2075_v8, %v2019_v53 }
 0x613   : > { %v2116_v17 = vadd.f32 %v2105_v6, %v2084_v3  ;;  %v2117_v14 = vadd.f32 %v2105_v6, %v2085_v10 }
 0x615   : > { %v2124_v29 = vmax.f32 %v2116_v17, 0.0  ;;  %v2125_v60 = vmax.f32 %v2117_v14, 0.0 }
 0x616   : > { %v1992_v23 = vpop.f32.mrf.mxu2  ;;  %v2011_v25 = vpop.f32.mrf.mxu3 }
 0x617   : > { %2132 = vst [vmem:[%s3861_s6 + $0x20] sm:$0xff] %v2124_v29  ;;  %v2020_v28 = vadd.f32 %v1992_v23, %v1927_v57  ;;  %v2021_v20 = vadd.f32 %v2011_v25, %v1946_v18 }
 0x618   : > { %2133 = vst [vmem:[%s3861_s6 + $0x28] sm:$0xff] %v2125_v60 }
 0x619   : > { %v2086_v7 = vadd.f32 %v2058_v63, %v2020_v28  ;;  %v2087_v42 = vadd.f32 %v2077_v51, %v2021_v20 }
 0x61b   : > { %v2118_v16 = vadd.f32 %v2110_v38, %v2086_v7  ;;  %v2119_v21 = vadd.f32 %v2110_v38, %v2087_v42 }
 0x61d   : > { %v2126_v27 = vmax.f32 %v2118_v16, 0.0  ;;  %v2127_v31 = vmax.f32 %v2119_v21, 0.0 }
 0x61f   : > { %2134 = vst [vmem:[%s3861_s6 + $0x30] sm:$0xff] %v2126_v27 }
 0x620   : > { %2135 = vst [vmem:[%s3861_s6 + $0x38] sm:$0xff] %v2127_v31 }
 0x621   : > { %2835 = shalt.err (!%p2832_p4)
}
 0x622   : > { %s2905_s7 = smov 256  }
 0x623   : > { %2461 = dma.vmem_to_hbm [thread:$0]  (%p3081_p11), %s2150_s27, 1024, %s2152_s25, %s2137_s3, %s2905_s7, %s2905_s7, %s4027_s8  }
 0x624 PF: > { %s4118_s6 = sld [smem:[#allocation8_spill]]  ;;  %p4120_p7 = scmp.ge.s32.totalorder %s2874_s28, 2 }
 0x626   : > { %p2468_p5 = pnand %p4120_p7, %p3085_p12 }
 0x628   : > { %p2469_p8 = pneg %p2468_p5 }
 0x62a   : > { %s2166_s11 = sand.u32 1, %s4118_s6  }
 0x62b   : > { %s2167_s9 = scalar_lea.sflag [#allocation4], %s2166_s11 }
 0x62c   : > { %2857 = dma.done.wait (%p2469_p8), %s2167_s9, 1024  }
 0x62d   : > { %2859 = vsyncadd (%p2469_p8), %s2167_s9, 4294966272  ;;  %s4121_s28 = sld [smem:[#allocation11_spill]]  ;;  %s4124_s5 = smov %s2866_s26 }
 0x62e   : > { %s4122_s0 = sld [smem:[#allocation9_spill]] }
 0x62f   : > { %s4123_s27 = sld [smem:[#allocation12_spill]] }
 0x633   : > { %p37_p10 = scmp.ge.s32.totalorder %s4121_s28, 4  }
 0x634   : > { %s4125_s26 = smov %s4122_s0 }
 0x635   :  { %39 = sbr.rel (!%p37_p10) target bundleno = 22 (0x16), region = 161 }
 0x63a   :  { %2173 = vsyncpa [#allocation3], 1 }
 0x63b   :  { %2175 = vsyncpa [#allocation3 + $0x1], 1 }
 0x63c   :  { %2176 = vsyncpa [#allocation4], 1 }
 0x63d   :  { %2178 = vsyncpa [#allocation4 + $0x1], 1 }

</bundles_post_ra>
